<compile_context>
chip_gen: v5e
topology: v5e:2x2
jax: 0.10.0
libtpu: 0.0.40
codegen_flags: <defaults>
</compile_context>

<pallas_src>
import math

import jax
import jax.numpy as jnp
from jax import lax
from jax.experimental import pallas as pl
from jax.experimental.pallas import tpu as pltpu

PAD_VALUE = 0
SOS_VALUE = 1


# ---------------------------------------------------------------------------
# Fused Seq2Seq kernel: encoder (2-layer biLSTM) + attention decoder
# ---------------------------------------------------------------------------
def seq2seq_kernel(x_emb_ref, mask_ref, dec_emb_ref,
                   w_l0_ref, b_l0_ref, w_l1_ref, b_l1_ref,
                   w_att_ref, b_att_ref, w_cell_ref, b_cell_ref,
                   w_out_ref, b_out_ref,
                   ypred_ref,
                   out01_ref, enc_ref):
    T, B, _ = x_emb_ref.shape               # encoder length, batch, embed dim
    Td = dec_emb_ref.shape[0]               # decoder length
    H = b_l0_ref.shape[1] // 4              # hidden size
    pad = jnp.float32(PAD_VALUE)
    zeros2 = jnp.zeros((2 * B, H), jnp.float32)

    def lstm_gates(gates, c):
        # PyTorch gate order: i, f, g, o. gates: (rows, 4H) f32, c: (rows, H) f32
        i = jax.nn.sigmoid(gates[:, 0:H])
        f = jax.nn.sigmoid(gates[:, H:2 * H])
        g = jnp.tanh(gates[:, 2 * H:3 * H])
        o = jax.nn.sigmoid(gates[:, 3 * H:4 * H])
        c_new = f * c + i * g
        h_new = o * jnp.tanh(c_new)
        return h_new, c_new

    # ---------------- encoder layer 0: fwd + bwd in one loop ----------------
    # Weight loads are scoped per-loop to keep the live vreg footprint small.
    w_l0 = w_l0_ref[...]                     # (E+H, 8H) bf16 = [W_fwd | W_bwd]
    b0f = b_l0_ref[0:1, :]                   # (1, 4H) f32
    b0b = b_l0_ref[1:2, :]

    def body_l0(t, carry):
        h, c = carry                         # (2B, H) f32; rows [:B]=fwd, [B:]=bwd
        tb = T - 1 - t
        m = jnp.concatenate([mask_ref[t], mask_ref[tb]], axis=0)        # (2B, 1)
        x_t = jnp.concatenate([x_emb_ref[t], x_emb_ref[tb]], axis=0)    # (2B, E) bf16
        lhs = jnp.concatenate([x_t, h.astype(jnp.bfloat16)], axis=1)    # (2B, E+H)
        raw = jnp.dot(lhs, w_l0, preferred_element_type=jnp.float32)    # (2B, 8H)
        gates = jnp.concatenate(
            [raw[:B, 0:4 * H] + b0f, raw[B:, 4 * H:8 * H] + b0b], axis=0)
        hn, cn = lstm_gates(gates, c)
        h = m * hn + (1.0 - m) * h           # freeze state past sequence length
        c = m * cn + (1.0 - m) * c
        out01_ref[t, :, 0:H] = h[:B]         # fwd half of layer-0 output
        out01_ref[tb, :, H:2 * H] = h[B:]    # bwd half
        return (h, c)

    lax.fori_loop(0, T, body_l0, (zeros2, zeros2))

    # ---------------- encoder layer 1: fwd + bwd in one loop ----------------
    w_l1 = w_l1_ref[...]                     # (3H, 8H) bf16
    b1f = b_l1_ref[0:1, :]
    b1b = b_l1_ref[1:2, :]

    def body_l1(t, carry):
        h, c = carry
        tb = T - 1 - t
        m = jnp.concatenate([mask_ref[t], mask_ref[tb]], axis=0)        # (2B, 1)
        x_t = jnp.concatenate([out01_ref[t], out01_ref[tb]], axis=0)    # (2B, 2H) f32
        lhs = jnp.concatenate([x_t, h], axis=1).astype(jnp.bfloat16)    # (2B, 3H)
        raw = jnp.dot(lhs, w_l1, preferred_element_type=jnp.float32)    # (2B, 8H)
        gates = jnp.concatenate(
            [raw[:B, 0:4 * H] + b1f, raw[B:, 4 * H:8 * H] + b1b], axis=0)
        hn, cn = lstm_gates(gates, c)
        h = m * hn + (1.0 - m) * h
        c = m * cn + (1.0 - m) * c
        out_val = m * h + (1.0 - m) * pad    # pad_packed fill at padded steps
        enc_ref[t, :, 0:H] = out_val[:B]
        enc_ref[tb, :, H:2 * H] = out_val[B:]
        return (h, c)

    h1, c1 = lax.fori_loop(0, T, body_l1, (zeros2, zeros2))

    # h = h[-2] + h[-1], c = c[-2] + c[-1]  (last layer fwd + bwd)
    h_dec = h1[:B] + h1[B:]                  # (B, H) f32
    c_dec = c1[:B] + c1[B:]

    # ---------------- decoder: attention + LSTMCell + vocab projection ------
    # One-time transpose to (B, T, 2H) so attention runs as batched MXU matmuls.
    enc_bt = jnp.transpose(enc_ref[...], (1, 0, 2)).astype(jnp.bfloat16)  # (B, T, 2H)
    w_att = w_att_ref[...]
    b_att = b_att_ref[...]
    w_cell = w_cell_ref[...]
    b_cell = b_cell_ref[...]
    w_out = w_out_ref[...]
    b_out = b_out_ref[...]

    def dec_body(i, carry):
        h, c = carry                                                    # (B, H) f32
        # Attention(cat([h, c]), encoder_output)
        q = jnp.concatenate([h, c], axis=1).astype(jnp.bfloat16)        # (B, 2H)
        att_h = jnp.dot(q, w_att, preferred_element_type=jnp.float32) + b_att
        s = jnp.einsum('bqd,btd->bqt', att_h.astype(jnp.bfloat16)[:, None, :],
                       enc_bt, preferred_element_type=jnp.float32)      # (B, 1, T)
        s = s - jnp.max(s, axis=2, keepdims=True)
        e = jnp.exp(s)
        a = e * pl.reciprocal(jnp.sum(e, axis=2, keepdims=True), approx=True)
        ctx = jnp.einsum('bqt,btd->bqd', a.astype(jnp.bfloat16), enc_bt,
                         preferred_element_type=jnp.float32)            # (B, 1, 2H)
        context = ctx[:, 0, :]                                          # (B, 2H)
        # LSTMCell on cat([embed(x), context]); fused ih/hh weight expects
        # lhs = [embed, context, h]
        lhs = jnp.concatenate(
            [dec_emb_ref[i], context.astype(jnp.bfloat16), h.astype(jnp.bfloat16)],
            axis=1)                                                     # (B, E+3H)
        gates = jnp.dot(lhs, w_cell, preferred_element_type=jnp.float32) + b_cell
        hn, cn = lstm_gates(gates, c)
        # output projection (reference module projects the *cell* state c)
        ypred_ref[i] = jnp.dot(cn.astype(jnp.bfloat16), w_out,
                               preferred_element_type=jnp.float32) + b_out
        return (hn, cn)

    lax.fori_loop(0, Td, dec_body, (h_dec, c_dec))


def run_seq2seq(x_emb, mask, dec_emb, p, V):
    T, B, _ = x_emb.shape
    Td = dec_emb.shape[0]
    H = p["b_l0"].shape[1] // 4
    vmem = pl.BlockSpec(memory_space=pltpu.MemorySpace.VMEM)
    args = (x_emb, mask, dec_emb,
            p["w_l0"], p["b_l0"], p["w_l1"], p["b_l1"],
            p["w_att"], p["b_att"], p["w_cell"], p["b_cell"],
            p["w_out"], p["b_out"])
    return pl.pallas_call(
        seq2seq_kernel,
        out_shape=jax.ShapeDtypeStruct((Td, B, V), jnp.float32),
        in_specs=[vmem] * len(args),
        out_specs=vmem,
        scratch_shapes=[pltpu.VMEM((T, B, 2 * H), jnp.float32),   # layer-0 outputs
                        pltpu.VMEM((T, B, 2 * H), jnp.float32)],  # encoder output
    )(*args)


# ---------------------------------------------------------------------------
# Parameter init (deterministic, synthetic) with pre-packed fused weights
# ---------------------------------------------------------------------------
def init_params(key, V, E, H):
    keys = jax.random.split(key, 32)
    it = iter(keys)

    def u(shape, scale):
        return jax.random.uniform(next(it), shape, jnp.float32,
                                  minval=-scale, maxval=scale)

    kH = 1.0 / math.sqrt(H)

    def lstm_dir(in_size):
        w_ih_t = u((in_size, 4 * H), kH)
        w_hh_t = u((H, 4 * H), kH)
        b = u((1, 4 * H), kH) + u((1, 4 * H), kH)        # b_ih + b_hh combined
        return jnp.concatenate([w_ih_t, w_hh_t], axis=0), b   # (in+H, 4H)

    embed = u((V, E), 1.0)

    w0f, b0f = lstm_dir(E)
    w0b, b0b = lstm_dir(E)
    w1f, b1f = lstm_dir(2 * H)
    w1b, b1b = lstm_dir(2 * H)

    k2H = 1.0 / math.sqrt(2 * H)
    w_att = u((2 * H, 2 * H), k2H)
    b_att = u((1, 2 * H), k2H)
    w_cell, b_cell = lstm_dir(E + 2 * H)
    w_out = u((H, V), kH)
    b_out = u((1, V), kH)

    bf16 = jnp.bfloat16
    return {
        "embed": embed,
        "H": H,
        # direction-packed encoder weights: [W_fwd | W_bwd] along the gate axis
        "w_l0": jnp.concatenate([w0f, w0b], axis=1).astype(bf16),   # (E+H, 8H)
        "b_l0": jnp.concatenate([b0f, b0b], axis=0),                # (2, 4H)
        "w_l1": jnp.concatenate([w1f, w1b], axis=1).astype(bf16),   # (3H, 8H)
        "b_l1": jnp.concatenate([b1f, b1b], axis=0),                # (2, 4H)
        "w_att": w_att.astype(bf16), "b_att": b_att,
        "w_cell": w_cell.astype(bf16), "b_cell": b_cell,            # (E+3H, 4H)
        "w_out": w_out.astype(bf16), "b_out": b_out,
    }


def seq2seq_forward(params, x, y):
    embed = params["embed"]
    V = embed.shape[0]
    T_enc, B = x.shape

    # Encoder glue: lengths / mask / embedding gather (gather stays in XLA).
    lengths = jnp.sum((x != PAD_VALUE).astype(jnp.int32), axis=0)           # (B,)
    mask = (jnp.arange(T_enc)[:, None] < lengths[None, :]).astype(jnp.float32)
    mask = mask[:, :, None]                                                 # (T_enc, B, 1)
    x_emb = embed[x].astype(jnp.bfloat16)                                   # (T_enc, B, E)

    # Decoder glue: teacher-forced inputs are [sos, y[0], ..., y[-2]].
    sos = jnp.full((1, B), SOS_VALUE, dtype=x.dtype)
    dec_tokens = jnp.concatenate([sos, y[:-1]], axis=0)                     # (T_dec, B)
    dec_emb = embed[dec_tokens].astype(jnp.bfloat16)                        # (T_dec, B, E)

    return run_seq2seq(x_emb, mask, dec_emb, params, V)


if __name__ == "__main__":
    B, T_enc, T_dec = 8, 8, 4
    E, H, V = 32, 32, 64

    key = jax.random.PRNGKey(0)
    k_tok, k_y, k_param = jax.random.split(key, 3)

    # sequences padded at the end; at least one has full length so the padded
    # encoder output length equals T_enc (matches pad_packed_sequence shape).
    lengths = jnp.array([8, 7, 6, 5, 8, 4, 3, 8], dtype=jnp.int32)
    tok = jax.random.randint(k_tok, (T_enc, B), 2, V, dtype=jnp.int32)
    x = jnp.where(jnp.arange(T_enc)[:, None] < lengths[None, :], tok, PAD_VALUE)
    y = jax.random.randint(k_y, (T_dec, B), 2, V, dtype=jnp.int32)

    params = init_params(k_param, V, E, H)

    y_preds = seq2seq_forward(params, x, y)
    y_preds = jax.block_until_ready(y_preds)
    assert y_preds.shape == (T_dec, B, V)
    assert bool(jnp.all(jnp.isfinite(y_preds)))
    print("KERNEL_OK")
</pallas_src>

<mosaic_0001>
module attributes {stable_mosaic.version = 11 : i64} {
  func.func @seq2seq_kernel(%arg0: memref<8x8x32xbf16, #tpu.memory_space<vmem>>, %arg1: memref<8x8x1xf32, #tpu.memory_space<vmem>>, %arg2: memref<4x8x32xbf16, #tpu.memory_space<vmem>>, %arg3: memref<64x256xbf16, #tpu.memory_space<vmem>>, %arg4: memref<2x128xf32, #tpu.memory_space<vmem>>, %arg5: memref<96x256xbf16, #tpu.memory_space<vmem>>, %arg6: memref<2x128xf32, #tpu.memory_space<vmem>>, %arg7: memref<64x64xbf16, #tpu.memory_space<vmem>>, %arg8: memref<1x64xf32, #tpu.memory_space<vmem>>, %arg9: memref<128x128xbf16, #tpu.memory_space<vmem>>, %arg10: memref<1x128xf32, #tpu.memory_space<vmem>>, %arg11: memref<32x64xbf16, #tpu.memory_space<vmem>>, %arg12: memref<1x64xf32, #tpu.memory_space<vmem>>, %arg13: memref<4x8x64xf32, #tpu.memory_space<vmem>>, %arg14: memref<8x8x64xf32, #tpu.memory_space<vmem>>, %arg15: memref<8x8x64xf32, #tpu.memory_space<vmem>>) attributes {dimension_semantics = [], scalar_prefetch = 0 : i64, scratch_operands = 2 : i64, tpu.core_type = #tpu.core_type<tc>} {
    %cst = arith.constant 0.000000e+00 : f32
    %0 = vector.broadcast %cst : f32 to vector<16x32xf32>
    %c0 = arith.constant 0 : index
    %c0_0 = arith.constant 0 : index
    %1 = vector.load %arg3[%c0, %c0_0] : memref<64x256xbf16, #tpu.memory_space<vmem>>, vector<64x256xbf16>
    %c0_1 = arith.constant 0 : index
    %c0_2 = arith.constant 0 : index
    %2 = vector.load %arg4[%c0_1, %c0_2] : memref<2x128xf32, #tpu.memory_space<vmem>>, vector<1x128xf32>
    %c1 = arith.constant 1 : index
    %c0_3 = arith.constant 0 : index
    %3 = vector.load %arg4[%c1, %c0_3] : memref<2x128xf32, #tpu.memory_space<vmem>>, vector<1x128xf32>
    %c0_i32 = arith.constant 0 : i32
    %c8_i32 = arith.constant 8 : i32
    %4 = arith.addi %c0_i32, %c8_i32 : i32
    %c1_i32 = arith.constant 1 : i32
    %5:2 = scf.for %arg16 = %c0_i32 to %4 step %c1_i32 iter_args(%arg17 = %0, %arg18 = %0) -> (vector<16x32xf32>, vector<16x32xf32>)  : i32 {
      %c7_i32 = arith.constant 7 : i32
      %28 = arith.subi %c7_i32, %arg16 : i32
      %29 = arith.index_cast %arg16 : i32 to index
      %c0_34 = arith.constant 0 : index
      %c0_35 = arith.constant 0 : index
      %30 = vector.load %arg1[%29, %c0_34, %c0_35] : memref<8x8x1xf32, #tpu.memory_space<vmem>>, vector<1x8x1xf32>
      %31 = vector.shape_cast %30 : vector<1x8x1xf32> to vector<8x1xf32>
      %32 = arith.index_cast %28 : i32 to index
      %c0_36 = arith.constant 0 : index
      %c0_37 = arith.constant 0 : index
      %33 = vector.load %arg1[%32, %c0_36, %c0_37] : memref<8x8x1xf32, #tpu.memory_space<vmem>>, vector<1x8x1xf32>
      %34 = vector.shape_cast %33 : vector<1x8x1xf32> to vector<8x1xf32>
      %35 = tpu.concatenate %31, %34 in 0 : vector<8x1xf32>, vector<8x1xf32> -> vector<16x1xf32>
      %36 = arith.index_cast %arg16 : i32 to index
      %c0_38 = arith.constant 0 : index
      %c0_39 = arith.constant 0 : index
      %37 = vector.load %arg0[%36, %c0_38, %c0_39] : memref<8x8x32xbf16, #tpu.memory_space<vmem>>, vector<1x8x32xbf16>
      %38 = vector.shape_cast %37 : vector<1x8x32xbf16> to vector<8x32xbf16>
      %39 = arith.index_cast %28 : i32 to index
      %c0_40 = arith.constant 0 : index
      %c0_41 = arith.constant 0 : index
      %40 = vector.load %arg0[%39, %c0_40, %c0_41] : memref<8x8x32xbf16, #tpu.memory_space<vmem>>, vector<1x8x32xbf16>
      %41 = vector.shape_cast %40 : vector<1x8x32xbf16> to vector<8x32xbf16>
      %42 = tpu.concatenate %38, %41 in 0 : vector<8x32xbf16>, vector<8x32xbf16> -> vector<16x32xbf16>
      %43 = arith.truncf %arg17 : vector<16x32xf32> to vector<16x32xbf16>
      %44 = tpu.concatenate %42, %43 in 1 : vector<16x32xbf16>, vector<16x32xbf16> -> vector<16x64xbf16>
      %cst_42 = arith.constant dense<0.000000e+00> : vector<16x256xf32>
      %45 = tpu.matmul %44, %1, %cst_42 {dimension_numbers = #tpu.dot_dimension_numbers<[1], [0], [0], [1], [0, 0, 1, 1], [], []>} : vector<16x64xbf16>, vector<64x256xbf16>, vector<16x256xf32> -> vector<16x256xf32>
      %46 = vector.extract_strided_slice %45 {offsets = [0, 0], sizes = [8, 128], strides = [1, 1]} : vector<16x256xf32> to vector<8x128xf32>
      %47 = vector.broadcast %2 : vector<1x128xf32> to vector<8x128xf32>
      %48 = arith.addf %46, %47 : vector<8x128xf32>
      %49 = vector.extract_strided_slice %45 {offsets = [8, 128], sizes = [8, 128], strides = [1, 1]} : vector<16x256xf32> to vector<8x128xf32>
      %50 = vector.broadcast %3 : vector<1x128xf32> to vector<8x128xf32>
      %51 = arith.addf %49, %50 : vector<8x128xf32>
      %52 = tpu.concatenate %48, %51 in 0 : vector<8x128xf32>, vector<8x128xf32> -> vector<16x128xf32>
      %53 = vector.extract_strided_slice %52 {offsets = [0, 0], sizes = [16, 32], strides = [1, 1]} : vector<16x128xf32> to vector<16x32xf32>
      %54 = arith.negf %53 : vector<16x32xf32>
      %55 = math.exp %54 : vector<16x32xf32>
      %cst_43 = arith.constant 1.000000e+00 : f32
      %56 = vector.broadcast %cst_43 : f32 to vector<16x32xf32>
      %57 = arith.addf %56, %55 : vector<16x32xf32>
      %58 = arith.divf %56, %57 : vector<16x32xf32>
      %59 = vector.extract_strided_slice %52 {offsets = [0, 32], sizes = [16, 32], strides = [1, 1]} : vector<16x128xf32> to vector<16x32xf32>
      %60 = arith.negf %59 : vector<16x32xf32>
      %61 = math.exp %60 : vector<16x32xf32>
      %cst_44 = arith.constant 1.000000e+00 : f32
      %62 = vector.broadcast %cst_44 : f32 to vector<16x32xf32>
      %63 = arith.addf %62, %61 : vector<16x32xf32>
      %64 = arith.divf %62, %63 : vector<16x32xf32>
      %65 = vector.extract_strided_slice %52 {offsets = [0, 64], sizes = [16, 32], strides = [1, 1]} : vector<16x128xf32> to vector<16x32xf32>
      %66 = math.tanh %65 : vector<16x32xf32>
      %67 = vector.extract_strided_slice %52 {offsets = [0, 96], sizes = [16, 32], strides = [1, 1]} : vector<16x128xf32> to vector<16x32xf32>
      %68 = arith.negf %67 : vector<16x32xf32>
      %69 = math.exp %68 : vector<16x32xf32>
      %cst_45 = arith.constant 1.000000e+00 : f32
      %70 = vector.broadcast %cst_45 : f32 to vector<16x32xf32>
      %71 = arith.addf %70, %69 : vector<16x32xf32>
      %72 = arith.divf %70, %71 : vector<16x32xf32>
      %73 = arith.mulf %64, %arg18 : vector<16x32xf32>
      %74 = arith.mulf %58, %66 : vector<16x32xf32>
      %75 = arith.addf %73, %74 : vector<16x32xf32>
      %76 = math.tanh %75 : vector<16x32xf32>
      %77 = arith.mulf %72, %76 : vector<16x32xf32>
      %78 = vector.broadcast %35 : vector<16x1xf32> to vector<16x32xf32>
      %79 = arith.mulf %78, %77 : vector<16x32xf32>
      %cst_46 = arith.constant 1.000000e+00 : f32
      %80 = vector.broadcast %cst_46 : f32 to vector<16x1xf32>
      %81 = arith.subf %80, %35 : vector<16x1xf32>
      %82 = vector.broadcast %81 : vector<16x1xf32> to vector<16x32xf32>
      %83 = arith.mulf %82, %arg17 : vector<16x32xf32>
      %84 = arith.addf %79, %83 : vector<16x32xf32>
      %85 = vector.broadcast %35 : vector<16x1xf32> to vector<16x32xf32>
      %86 = arith.mulf %85, %75 : vector<16x32xf32>
      %cst_47 = arith.constant 1.000000e+00 : f32
      %87 = vector.broadcast %cst_47 : f32 to vector<16x1xf32>
      %88 = arith.subf %87, %35 : vector<16x1xf32>
      %89 = vector.broadcast %88 : vector<16x1xf32> to vector<16x32xf32>
      %90 = arith.mulf %89, %arg18 : vector<16x32xf32>
      %91 = arith.addf %86, %90 : vector<16x32xf32>
      %92 = vector.extract_strided_slice %84 {offsets = [0, 0], sizes = [8, 32], strides = [1, 1]} : vector<16x32xf32> to vector<8x32xf32>
      %93 = arith.index_cast %arg16 : i32 to index
      %c0_48 = arith.constant 0 : index
      %c0_49 = arith.constant 0 : index
      %94 = vector.load %arg14[%93, %c0_48, %c0_49] : memref<8x8x64xf32, #tpu.memory_space<vmem>>, vector<1x8x32xf32>
      %95 = vector.shape_cast %94 : vector<1x8x32xf32> to vector<8x32xf32>
      %96 = vector.shape_cast %92 : vector<8x32xf32> to vector<1x8x32xf32>
      tpu.vector_store %arg14[%93, %c0_48, %c0_49], %96 {strides = array<i32>} : memref<8x8x64xf32, #tpu.memory_space<vmem>>, vector<1x8x32xf32>,
      %97 = vector.extract_strided_slice %84 {offsets = [8, 0], sizes = [8, 32], strides = [1, 1]} : vector<16x32xf32> to vector<8x32xf32>
      %98 = arith.index_cast %28 : i32 to index
      %c0_50 = arith.constant 0 : index
      %c32 = arith.constant 32 : index
      %99 = vector.load %arg14[%98, %c0_50, %c32] : memref<8x8x64xf32, #tpu.memory_space<vmem>>, vector<1x8x32xf32>
      %100 = vector.shape_cast %99 : vector<1x8x32xf32> to vector<8x32xf32>
      %101 = vector.shape_cast %97 : vector<8x32xf32> to vector<1x8x32xf32>
      tpu.vector_store %arg14[%98, %c0_50, %c32], %101 {strides = array<i32>} : memref<8x8x64xf32, #tpu.memory_space<vmem>>, vector<1x8x32xf32>,
      scf.yield %84, %91 : vector<16x32xf32>, vector<16x32xf32>
    }
    %c8_i32_4 = arith.constant 8 : i32
    %c0_5 = arith.constant 0 : index
    %c0_6 = arith.constant 0 : index
    %6 = vector.load %arg5[%c0_5, %c0_6] : memref<96x256xbf16, #tpu.memory_space<vmem>>, vector<96x256xbf16>
    %c0_7 = arith.constant 0 : index
    %c0_8 = arith.constant 0 : index
    %7 = vector.load %arg6[%c0_7, %c0_8] : memref<2x128xf32, #tpu.memory_space<vmem>>, vector<1x128xf32>
    %c1_9 = arith.constant 1 : index
    %c0_10 = arith.constant 0 : index
    %8 = vector.load %arg6[%c1_9, %c0_10] : memref<2x128xf32, #tpu.memory_space<vmem>>, vector<1x128xf32>
    %cst_11 = arith.constant 0.000000e+00 : f32
    %c0_i32_12 = arith.constant 0 : i32
    %c8_i32_13 = arith.constant 8 : i32
    %9 = arith.addi %c0_i32_12, %c8_i32_13 : i32
    %c1_i32_14 = arith.constant 1 : i32
    %10:2 = scf.for %arg16 = %c0_i32_12 to %9 step %c1_i32_14 iter_args(%arg17 = %0, %arg18 = %0) -> (vector<16x32xf32>, vector<16x32xf32>)  : i32 {
      %c7_i32 = arith.constant 7 : i32
      %28 = arith.subi %c7_i32, %arg16 : i32
      %29 = arith.index_cast %arg16 : i32 to index
      %c0_34 = arith.constant 0 : index
      %c0_35 = arith.constant 0 : index
      %30 = vector.load %arg1[%29, %c0_34, %c0_35] : memref<8x8x1xf32, #tpu.memory_space<vmem>>, vector<1x8x1xf32>
      %31 = vector.shape_cast %30 : vector<1x8x1xf32> to vector<8x1xf32>
      %32 = arith.index_cast %28 : i32 to index
      %c0_36 = arith.constant 0 : index
      %c0_37 = arith.constant 0 : index
      %33 = vector.load %arg1[%32, %c0_36, %c0_37] : memref<8x8x1xf32, #tpu.memory_space<vmem>>, vector<1x8x1xf32>
      %34 = vector.shape_cast %33 : vector<1x8x1xf32> to vector<8x1xf32>
      %35 = tpu.concatenate %31, %34 in 0 : vector<8x1xf32>, vector<8x1xf32> -> vector<16x1xf32>
      %36 = arith.index_cast %arg16 : i32 to index
      %c0_38 = arith.constant 0 : index
      %c0_39 = arith.constant 0 : index
      %37 = vector.load %arg14[%36, %c0_38, %c0_39] : memref<8x8x64xf32, #tpu.memory_space<vmem>>, vector<1x8x64xf32>
      %38 = vector.shape_cast %37 : vector<1x8x64xf32> to vector<8x64xf32>
      %39 = arith.index_cast %28 : i32 to index
      %c0_40 = arith.constant 0 : index
      %c0_41 = arith.constant 0 : index
      %40 = vector.load %arg14[%39, %c0_40, %c0_41] : memref<8x8x64xf32, #tpu.memory_space<vmem>>, vector<1x8x64xf32>
      %41 = vector.shape_cast %40 : vector<1x8x64xf32> to vector<8x64xf32>
      %42 = tpu.concatenate %38, %41 in 0 : vector<8x64xf32>, vector<8x64xf32> -> vector<16x64xf32>
      %43 = tpu.concatenate %42, %arg17 in 1 : vector<16x64xf32>, vector<16x32xf32> -> vector<16x96xf32>
      %44 = arith.truncf %43 : vector<16x96xf32> to vector<16x96xbf16>
      %cst_42 = arith.constant dense<0.000000e+00> : vector<16x256xf32>
      %45 = tpu.matmul %44, %6, %cst_42 {dimension_numbers = #tpu.dot_dimension_numbers<[1], [0], [0], [1], [0, 0, 1, 1], [], []>} : vector<16x96xbf16>, vector<96x256xbf16>, vector<16x256xf32> -> vector<16x256xf32>
      %46 = vector.extract_strided_slice %45 {offsets = [0, 0], sizes = [8, 128], strides = [1, 1]} : vector<16x256xf32> to vector<8x128xf32>
      %47 = vector.broadcast %7 : vector<1x128xf32> to vector<8x128xf32>
      %48 = arith.addf %46, %47 : vector<8x128xf32>
      %49 = vector.extract_strided_slice %45 {offsets = [8, 128], sizes = [8, 128], strides = [1, 1]} : vector<16x256xf32> to vector<8x128xf32>
      %50 = vector.broadcast %8 : vector<1x128xf32> to vector<8x128xf32>
      %51 = arith.addf %49, %50 : vector<8x128xf32>
      %52 = tpu.concatenate %48, %51 in 0 : vector<8x128xf32>, vector<8x128xf32> -> vector<16x128xf32>
      %53 = vector.extract_strided_slice %52 {offsets = [0, 0], sizes = [16, 32], strides = [1, 1]} : vector<16x128xf32> to vector<16x32xf32>
      %54 = arith.negf %53 : vector<16x32xf32>
      %55 = math.exp %54 : vector<16x32xf32>
      %cst_43 = arith.constant 1.000000e+00 : f32
      %56 = vector.broadcast %cst_43 : f32 to vector<16x32xf32>
      %57 = arith.addf %56, %55 : vector<16x32xf32>
      %58 = arith.divf %56, %57 : vector<16x32xf32>
      %59 = vector.extract_strided_slice %52 {offsets = [0, 32], sizes = [16, 32], strides = [1, 1]} : vector<16x128xf32> to vector<16x32xf32>
      %60 = arith.negf %59 : vector<16x32xf32>
      %61 = math.exp %60 : vector<16x32xf32>
      %cst_44 = arith.constant 1.000000e+00 : f32
      %62 = vector.broadcast %cst_44 : f32 to vector<16x32xf32>
      %63 = arith.addf %62, %61 : vector<16x32xf32>
      %64 = arith.divf %62, %63 : vector<16x32xf32>
      %65 = vector.extract_strided_slice %52 {offsets = [0, 64], sizes = [16, 32], strides = [1, 1]} : vector<16x128xf32> to vector<16x32xf32>
      %66 = math.tanh %65 : vector<16x32xf32>
      %67 = vector.extract_strided_slice %52 {offsets = [0, 96], sizes = [16, 32], strides = [1, 1]} : vector<16x128xf32> to vector<16x32xf32>
      %68 = arith.negf %67 : vector<16x32xf32>
      %69 = math.exp %68 : vector<16x32xf32>
      %cst_45 = arith.constant 1.000000e+00 : f32
      %70 = vector.broadcast %cst_45 : f32 to vector<16x32xf32>
      %71 = arith.addf %70, %69 : vector<16x32xf32>
      %72 = arith.divf %70, %71 : vector<16x32xf32>
      %73 = arith.mulf %64, %arg18 : vector<16x32xf32>
      %74 = arith.mulf %58, %66 : vector<16x32xf32>
      %75 = arith.addf %73, %74 : vector<16x32xf32>
      %76 = math.tanh %75 : vector<16x32xf32>
      %77 = arith.mulf %72, %76 : vector<16x32xf32>
      %78 = vector.broadcast %35 : vector<16x1xf32> to vector<16x32xf32>
      %79 = arith.mulf %78, %77 : vector<16x32xf32>
      %cst_46 = arith.constant 1.000000e+00 : f32
      %80 = vector.broadcast %cst_46 : f32 to vector<16x1xf32>
      %81 = arith.subf %80, %35 : vector<16x1xf32>
      %82 = vector.broadcast %81 : vector<16x1xf32> to vector<16x32xf32>
      %83 = arith.mulf %82, %arg17 : vector<16x32xf32>
      %84 = arith.addf %79, %83 : vector<16x32xf32>
      %85 = vector.broadcast %35 : vector<16x1xf32> to vector<16x32xf32>
      %86 = arith.mulf %85, %75 : vector<16x32xf32>
      %cst_47 = arith.constant 1.000000e+00 : f32
      %87 = vector.broadcast %cst_47 : f32 to vector<16x1xf32>
      %88 = arith.subf %87, %35 : vector<16x1xf32>
      %89 = vector.broadcast %88 : vector<16x1xf32> to vector<16x32xf32>
      %90 = arith.mulf %89, %arg18 : vector<16x32xf32>
      %91 = arith.addf %86, %90 : vector<16x32xf32>
      %92 = vector.broadcast %35 : vector<16x1xf32> to vector<16x32xf32>
      %93 = arith.mulf %92, %84 : vector<16x32xf32>
      %cst_48 = arith.constant 1.000000e+00 : f32
      %94 = vector.broadcast %cst_48 : f32 to vector<16x1xf32>
      %95 = arith.subf %94, %35 : vector<16x1xf32>
      %96 = vector.broadcast %cst_11 : f32 to vector<16x1xf32>
      %97 = arith.mulf %95, %96 : vector<16x1xf32>
      %98 = vector.broadcast %97 : vector<16x1xf32> to vector<16x32xf32>
      %99 = arith.addf %93, %98 : vector<16x32xf32>
      %100 = vector.extract_strided_slice %99 {offsets = [0, 0], sizes = [8, 32], strides = [1, 1]} : vector<16x32xf32> to vector<8x32xf32>
      %101 = arith.index_cast %arg16 : i32 to index
      %c0_49 = arith.constant 0 : index
      %c0_50 = arith.constant 0 : index
      %102 = vector.load %arg15[%101, %c0_49, %c0_50] : memref<8x8x64xf32, #tpu.memory_space<vmem>>, vector<1x8x32xf32>
      %103 = vector.shape_cast %102 : vector<1x8x32xf32> to vector<8x32xf32>
      %104 = vector.shape_cast %100 : vector<8x32xf32> to vector<1x8x32xf32>
      tpu.vector_store %arg15[%101, %c0_49, %c0_50], %104 {strides = array<i32>} : memref<8x8x64xf32, #tpu.memory_space<vmem>>, vector<1x8x32xf32>,
      %105 = vector.extract_strided_slice %99 {offsets = [8, 0], sizes = [8, 32], strides = [1, 1]} : vector<16x32xf32> to vector<8x32xf32>
      %106 = arith.index_cast %28 : i32 to index
      %c0_51 = arith.constant 0 : index
      %c32 = arith.constant 32 : index
      %107 = vector.load %arg15[%106, %c0_51, %c32] : memref<8x8x64xf32, #tpu.memory_space<vmem>>, vector<1x8x32xf32>
      %108 = vector.shape_cast %107 : vector<1x8x32xf32> to vector<8x32xf32>
      %109 = vector.shape_cast %105 : vector<8x32xf32> to vector<1x8x32xf32>
      tpu.vector_store %arg15[%106, %c0_51, %c32], %109 {strides = array<i32>} : memref<8x8x64xf32, #tpu.memory_space<vmem>>, vector<1x8x32xf32>,
      scf.yield %84, %91 : vector<16x32xf32>, vector<16x32xf32>
    }
    %c8_i32_15 = arith.constant 8 : i32
    %11 = vector.extract_strided_slice %10#0 {offsets = [0, 0], sizes = [8, 32], strides = [1, 1]} : vector<16x32xf32> to vector<8x32xf32>
    %12 = vector.extract_strided_slice %10#0 {offsets = [8, 0], sizes = [8, 32], strides = [1, 1]} : vector<16x32xf32> to vector<8x32xf32>
    %13 = arith.addf %11, %12 : vector<8x32xf32>
    %14 = vector.extract_strided_slice %10#1 {offsets = [0, 0], sizes = [8, 32], strides = [1, 1]} : vector<16x32xf32> to vector<8x32xf32>
    %15 = vector.extract_strided_slice %10#1 {offsets = [8, 0], sizes = [8, 32], strides = [1, 1]} : vector<16x32xf32> to vector<8x32xf32>
    %16 = arith.addf %14, %15 : vector<8x32xf32>
    %c0_16 = arith.constant 0 : index
    %c0_17 = arith.constant 0 : index
    %c0_18 = arith.constant 0 : index
    %17 = vector.load %arg15[%c0_16, %c0_17, %c0_18] : memref<8x8x64xf32, #tpu.memory_space<vmem>>, vector<8x8x64xf32>
    %18 = tpu.transpose %17, [1, 0, 2] : vector<8x8x64xf32> -> vector<8x8x64xf32>
    %19 = arith.truncf %18 : vector<8x8x64xf32> to vector<8x8x64xbf16>
    %c0_19 = arith.constant 0 : index
    %c0_20 = arith.constant 0 : index
    %20 = vector.load %arg7[%c0_19, %c0_20] : memref<64x64xbf16, #tpu.memory_space<vmem>>, vector<64x64xbf16>
    %c0_21 = arith.constant 0 : index
    %c0_22 = arith.constant 0 : index
    %21 = vector.load %arg8[%c0_21, %c0_22] : memref<1x64xf32, #tpu.memory_space<vmem>>, vector<1x64xf32>
    %c0_23 = arith.constant 0 : index
    %c0_24 = arith.constant 0 : index
    %22 = vector.load %arg9[%c0_23, %c0_24] : memref<128x128xbf16, #tpu.memory_space<vmem>>, vector<128x128xbf16>
    %c0_25 = arith.constant 0 : index
    %c0_26 = arith.constant 0 : index
    %23 = vector.load %arg10[%c0_25, %c0_26] : memref<1x128xf32, #tpu.memory_space<vmem>>, vector<1x128xf32>
    %c0_27 = arith.constant 0 : index
    %c0_28 = arith.constant 0 : index
    %24 = vector.load %arg11[%c0_27, %c0_28] : memref<32x64xbf16, #tpu.memory_space<vmem>>, vector<32x64xbf16>
    %c0_29 = arith.constant 0 : index
    %c0_30 = arith.constant 0 : index
    %25 = vector.load %arg12[%c0_29, %c0_30] : memref<1x64xf32, #tpu.memory_space<vmem>>, vector<1x64xf32>
    %c0_i32_31 = arith.constant 0 : i32
    %c4_i32 = arith.constant 4 : i32
    %26 = arith.addi %c0_i32_31, %c4_i32 : i32
    %c1_i32_32 = arith.constant 1 : i32
    %27:2 = scf.for %arg16 = %c0_i32_31 to %26 step %c1_i32_32 iter_args(%arg17 = %13, %arg18 = %16) -> (vector<8x32xf32>, vector<8x32xf32>)  : i32 {
      %28 = tpu.concatenate %arg17, %arg18 in 1 : vector<8x32xf32>, vector<8x32xf32> -> vector<8x64xf32>
      %29 = arith.truncf %28 : vector<8x64xf32> to vector<8x64xbf16>
      %cst_34 = arith.constant dense<0.000000e+00> : vector<8x64xf32>
      %30 = tpu.matmul %29, %20, %cst_34 {dimension_numbers = #tpu.dot_dimension_numbers<[1], [0], [0], [1], [0, 0, 1, 1], [], []>} : vector<8x64xbf16>, vector<64x64xbf16>, vector<8x64xf32> -> vector<8x64xf32>
      %31 = vector.broadcast %21 : vector<1x64xf32> to vector<8x64xf32>
      %32 = arith.addf %30, %31 : vector<8x64xf32>
      %33 = arith.truncf %32 : vector<8x64xf32> to vector<8x64xbf16>
      %34 = vector.shape_cast %33 : vector<8x64xbf16> to vector<8x1x64xbf16>
      "tpu.trace_start"() <{level = 10 : i32, message = "bqd,btd->bqt"}> : () -> ()
      %cst_35 = arith.constant dense<0.000000e+00> : vector<8x1x8xf32>
      %35 = tpu.matmul %34, %19, %cst_35 {dimension_numbers = #tpu.dot_dimension_numbers<[2], [2], [1], [1], [0, 0, 0, 1, 1, 1], [0], [0]>} : vector<8x1x64xbf16>, vector<8x8x64xbf16>, vector<8x1x8xf32> -> vector<8x1x8xf32>
      "tpu.trace_stop"() : () -> ()
      %cst_36 = arith.constant dense<0xFF800000> : vector<8x1xf32>
      %36 = vector.multi_reduction <maximumf>, %35, %cst_36 [2] : vector<8x1x8xf32> to vector<8x1xf32>
      %37 = vector.shape_cast %36 : vector<8x1xf32> to vector<8x1x1xf32>
      %38 = vector.broadcast %37 : vector<8x1x1xf32> to vector<8x1x8xf32>
      %39 = arith.subf %35, %38 : vector<8x1x8xf32>
      %40 = math.exp %39 : vector<8x1x8xf32>
      %cst_37 = arith.constant dense<0.000000e+00> : vector<8x1xf32>
      %41 = vector.multi_reduction <add>, %40, %cst_37 [2] : vector<8x1x8xf32> to vector<8x1xf32>
      %42 = vector.shape_cast %41 : vector<8x1xf32> to vector<8x1x1xf32>
      %43 = tpu.reciprocal %42 {approx = true} : vector<8x1x1xf32> -> vector<8x1x1xf32>
      %44 = vector.broadcast %43 : vector<8x1x1xf32> to vector<8x1x8xf32>
      %45 = arith.mulf %40, %44 : vector<8x1x8xf32>
      %46 = arith.truncf %45 : vector<8x1x8xf32> to vector<8x1x8xbf16>
      "tpu.trace_start"() <{level = 10 : i32, message = "bqt,btd->bqd"}> : () -> ()
      %cst_38 = arith.constant dense<0.000000e+00> : vector<8x1x64xf32>
      %47 = tpu.matmul %46, %19, %cst_38 {dimension_numbers = #tpu.dot_dimension_numbers<[2], [1], [1], [2], [0, 0, 0, 1, 1, 2], [0], [0]>} : vector<8x1x8xbf16>, vector<8x8x64xbf16>, vector<8x1x64xf32> -> vector<8x1x64xf32>
      "tpu.trace_stop"() : () -> ()
      %48 = vector.shape_cast %47 : vector<8x1x64xf32> to vector<8x64xf32>
      %49 = arith.index_cast %arg16 : i32 to index
      %c0_39 = arith.constant 0 : index
      %c0_40 = arith.constant 0 : index
      %50 = vector.load %arg2[%49, %c0_39, %c0_40] : memref<4x8x32xbf16, #tpu.memory_space<vmem>>, vector<1x8x32xbf16>
      %51 = vector.shape_cast %50 : vector<1x8x32xbf16> to vector<8x32xbf16>
      %52 = arith.truncf %48 : vector<8x64xf32> to vector<8x64xbf16>
      %53 = arith.truncf %arg17 : vector<8x32xf32> to vector<8x32xbf16>
      %54 = tpu.concatenate %51, %52, %53 in 1 : vector<8x32xbf16>, vector<8x64xbf16>, vector<8x32xbf16> -> vector<8x128xbf16>
      %cst_41 = arith.constant dense<0.000000e+00> : vector<8x128xf32>
      %55 = tpu.matmul %54, %22, %cst_41 {dimension_numbers = #tpu.dot_dimension_numbers<[1], [0], [0], [1], [0, 0, 1, 1], [], []>} : vector<8x128xbf16>, vector<128x128xbf16>, vector<8x128xf32> -> vector<8x128xf32>
      %56 = vector.broadcast %23 : vector<1x128xf32> to vector<8x128xf32>
      %57 = arith.addf %55, %56 : vector<8x128xf32>
      %58 = vector.extract_strided_slice %57 {offsets = [0, 0], sizes = [8, 32], strides = [1, 1]} : vector<8x128xf32> to vector<8x32xf32>
      %59 = arith.negf %58 : vector<8x32xf32>
      %60 = math.exp %59 : vector<8x32xf32>
      %cst_42 = arith.constant 1.000000e+00 : f32
      %61 = vector.broadcast %cst_42 : f32 to vector<8x32xf32>
      %62 = arith.addf %61, %60 : vector<8x32xf32>
      %63 = arith.divf %61, %62 : vector<8x32xf32>
      %64 = vector.extract_strided_slice %57 {offsets = [0, 32], sizes = [8, 32], strides = [1, 1]} : vector<8x128xf32> to vector<8x32xf32>
      %65 = arith.negf %64 : vector<8x32xf32>
      %66 = math.exp %65 : vector<8x32xf32>
      %cst_43 = arith.constant 1.000000e+00 : f32
      %67 = vector.broadcast %cst_43 : f32 to vector<8x32xf32>
      %68 = arith.addf %67, %66 : vector<8x32xf32>
      %69 = arith.divf %67, %68 : vector<8x32xf32>
      %70 = vector.extract_strided_slice %57 {offsets = [0, 64], sizes = [8, 32], strides = [1, 1]} : vector<8x128xf32> to vector<8x32xf32>
      %71 = math.tanh %70 : vector<8x32xf32>
      %72 = vector.extract_strided_slice %57 {offsets = [0, 96], sizes = [8, 32], strides = [1, 1]} : vector<8x128xf32> to vector<8x32xf32>
      %73 = arith.negf %72 : vector<8x32xf32>
      %74 = math.exp %73 : vector<8x32xf32>
      %cst_44 = arith.constant 1.000000e+00 : f32
      %75 = vector.broadcast %cst_44 : f32 to vector<8x32xf32>
      %76 = arith.addf %75, %74 : vector<8x32xf32>
      %77 = arith.divf %75, %76 : vector<8x32xf32>
      %78 = arith.mulf %69, %arg18 : vector<8x32xf32>
      %79 = arith.mulf %63, %71 : vector<8x32xf32>
      %80 = arith.addf %78, %79 : vector<8x32xf32>
      %81 = math.tanh %80 : vector<8x32xf32>
      %82 = arith.mulf %77, %81 : vector<8x32xf32>
      %83 = arith.truncf %80 : vector<8x32xf32> to vector<8x32xbf16>
      %cst_45 = arith.constant dense<0.000000e+00> : vector<8x64xf32>
      %84 = tpu.matmul %83, %24, %cst_45 {dimension_numbers = #tpu.dot_dimension_numbers<[1], [0], [0], [1], [0, 0, 1, 1], [], []>} : vector<8x32xbf16>, vector<32x64xbf16>, vector<8x64xf32> -> vector<8x64xf32>
      %85 = vector.broadcast %25 : vector<1x64xf32> to vector<8x64xf32>
      %86 = arith.addf %84, %85 : vector<8x64xf32>
      %87 = arith.index_cast %arg16 : i32 to index
      %c0_46 = arith.constant 0 : index
      %c0_47 = arith.constant 0 : index
      %88 = vector.load %arg13[%87, %c0_46, %c0_47] : memref<4x8x64xf32, #tpu.memory_space<vmem>>, vector<1x8x64xf32>
      %89 = vector.shape_cast %88 : vector<1x8x64xf32> to vector<8x64xf32>
      %90 = vector.shape_cast %86 : vector<8x64xf32> to vector<1x8x64xf32>
      tpu.vector_store %arg13[%87, %c0_46, %c0_47], %90 {strides = array<i32>} : memref<4x8x64xf32, #tpu.memory_space<vmem>>, vector<1x8x64xf32>,
      scf.yield %82, %80 : vector<8x32xf32>, vector<8x32xf32>
    }
    %c4_i32_33 = arith.constant 4 : i32
    return
  }
}

</mosaic_0001>

<bundles_post_ra>
// kernel: tpu_custom_call.1
= control target key start
LH: loop header
LB: loop body
LE: loop exit
PB: predicated region body
PF: predicated region fallthrough
CT: control target
= control target key end

     0   :  { %18 = vsyncpa [#allocation5], 0  ;;  %s3191_s0 = inlined_call_operand.hbm [shape: bf16[8,8,32], index: 0, kind: input, shape index: {}]   ;;  %s3192_s1 = inlined_call_operand.vmem [shape: f32[8,8,1], index: 1, kind: input, shape index: {}]   ;;  %s3193_s2 = inlined_call_operand.hbm [shape: bf16[4,8,32], index: 2, kind: input, shape index: {}]   ;;  %s3194_s3 = inlined_call_operand.vmem [shape: bf16[64,256], index: 3, kind: input, shape index: {}]   ;;  %s3195_s4 = inlined_call_operand.hbm [shape: f32[2,128], index: 4, kind: input, shape index: {}]   ;;  %s3196_s5 = inlined_call_operand.hbm [shape: bf16[96,256], index: 5, kind: input, shape index: {}]   ;;  %s3197_s6 = inlined_call_operand.hbm [shape: f32[2,128], index: 6, kind: input, shape index: {}]   ;;  %s3198_s7 = inlined_call_operand.hbm [shape: bf16[64,64], index: 7, kind: input, shape index: {}]   ;;  %s3199_s8 = inlined_call_operand.hbm [shape: f32[1,64], index: 8, kind: input, shape index: {}]   ;;  %s3200_s9 = inlined_call_operand.hbm [shape: bf16[128,128], index: 9, kind: input, shape index: {}]   ;;  %s3201_s10 = inlined_call_operand.vmem [shape: f32[1,128], index: 10, kind: input, shape index: {}]   ;;  %s3202_s11 = inlined_call_operand.vmem [shape: bf16[32,64], index: 11, kind: input, shape index: {}]   ;;  %s3203_s12 = inlined_call_operand.vmem [shape: f32[1,64], index: 12, kind: input, shape index: {}]   ;;  %s3204_s13 = inlined_call_operand.hbm [shape: f32[4,8,64], index: 13, kind: output, shape index: {}]  }
   0x1   :  { %19 = vsyncpa [#allocation8], 0 }
   0x2   :  { %20 = vsyncpa [#allocation11], 0 }
   0x3   :  { %21 = vsyncpa [#allocation14], 0 }
   0x4   :  { %22 = vsyncpa [#allocation17], 0 }
   0x5   :  { %23 = vsyncpa [#allocation6], 0  ;;  %s43_s27 = sshll.u32 %s3193_s2, 4  ;;  %s2418_s28 = smov [#allocation7]   ;;  %s44_s27 = int_to_ptr.hbm [resolvable:$true] %s43_s27 }
   0x6   :  { %s45_s29 = sshll.u32 %s2418_s28, 4  ;;  %s69_s15 = sshll.u32 %s3196_s5, 4  ;;  %s46_s29 = int_to_ptr.vmem [resolvable:$true] %s45_s29  ;;  %s70_s15 = int_to_ptr.hbm [resolvable:$true] %s69_s15 }
   0x7   :  { %s2419_s16 = smov 64   ;;  %s2420_s17 = smov 4  }
   0x8   :  { %51 = dma.hbm_to_vmem [thread:$0]  %s44_s27, 256, %s46_s29, [#allocation8], %s2419_s16, %s2419_s16, %s2420_s17  }
   0x9   :  { %s2421_s18 = smov [#allocation10]   ;;  %s2422_s20 = smov 128  }
   0xa   :  { %s71_s19 = sshll.u32 %s2421_s18, 4  ;;  %s2423_s2 = smov 8   ;;  %s72_s19 = int_to_ptr.vmem [resolvable:$true] %s71_s19 }
   0xb   :  { %77 = dma.hbm_to_vmem [thread:$0]  %s70_s15, 1536, %s72_s19, [#allocation11], %s2422_s20, %s2422_s20, %s2423_s2  }
   0xc   :  { %s93_s5 = sshll.u32 %s3198_s7, 4  ;;  %s2424_s23 = smov [#allocation13]   ;;  %s94_s5 = int_to_ptr.hbm [resolvable:$true] %s93_s5 }
   0xd   :  { %s95_s24 = sshll.u32 %s2424_s23, 4  ;;  %s28_s27 = sshll.u32 %s3191_s0, 4  ;;  %s96_s24 = int_to_ptr.vmem [resolvable:$true] %s95_s24  ;;  %s29_s27 = int_to_ptr.hbm [resolvable:$true] %s28_s27 }
   0xe   :  { %101 = dma.hbm_to_vmem [thread:$0]  %s94_s5, 512, %s96_s24, [#allocation14], %s2419_s16, %s2419_s16, %s2420_s17  }
   0xf   :  { %s2425_s28 = smov [#allocation4]   ;;  %s59_s15 = sshll.u32 %s3195_s4, 4  ;;  %s60_s15 = int_to_ptr.hbm [resolvable:$true] %s59_s15 }
  0x10   :  { %s30_s29 = sshll.u32 %s2425_s28, 4  ;;  %s83_s0 = sshll.u32 %s3197_s6, 4  ;;  %s31_s29 = int_to_ptr.vmem [resolvable:$true] %s30_s29  ;;  %s84_s0 = int_to_ptr.hbm [resolvable:$true] %s83_s0 }
  0x11   :  { %36 = dma.hbm_to_vmem [thread:$0]  %s29_s27, 512, %s31_s29, [#allocation5], %s2419_s16, %s2419_s16, %s2420_s17  }
  0x12   :  { %s2426_s19 = smov [#allocation9]   ;;  %s2427_s22 = smov [#allocation12]  }
  0x13   :  { %s61_s21 = sshll.u32 %s2426_s19, 4  ;;  %s85_s5 = sshll.u32 %s2427_s22, 4  ;;  %s62_s21 = int_to_ptr.vmem [resolvable:$true] %s61_s21  ;;  %s86_s5 = int_to_ptr.vmem [resolvable:$true] %s85_s5 }
  0x14   :  { %64 = dma.hbm_to_vmem [thread:$0]  %s60_s15, 32, %s62_s21, [#allocation8]  }
  0x15   :  { %s107_s4 = sshll.u32 %s3199_s8, 4  ;;  %s117_s27 = sshll.u32 %s3200_s9, 4  ;;  %s108_s4 = int_to_ptr.hbm [resolvable:$true] %s107_s4  ;;  %s118_s27 = int_to_ptr.hbm [resolvable:$true] %s117_s27 }
  0x16   :  { %88 = dma.hbm_to_vmem [thread:$0]  %s84_s0, 32, %s86_s5, [#allocation11]  }
  0x17   :  { %s2428_s28 = smov [#allocation15]   ;;  %s2429_s29 = smov [#allocation16]  }
  0x18   :  { %s109_s6 = sshll.u32 %s2428_s28, 4  ;;  %s119_s30 = sshll.u32 %s2429_s29, 4  ;;  %s110_s6 = int_to_ptr.vmem [resolvable:$true] %s109_s6  ;;  %s120_s30 = int_to_ptr.vmem [resolvable:$true] %s119_s30 }
  0x19   :  { %112 = dma.hbm_to_vmem [thread:$0]  %s108_s4, 16, %s110_s6, [#allocation14]  }
  0x1a   :  { %125 = dma.hbm_to_vmem [thread:$0]  %s118_s27, 1024, %s120_s30, [#allocation17], %s2419_s16, %s2419_s16, %s2420_s17  }
  0x1b   :  { %2354 = dma.done.wait [#allocation5], 512  }
  0x1c   :  { %2355 = vsyncadd [#allocation5], 4294966784 }
  0x1d   :  { %2356 = dma.done.wait [#allocation8], 288  }
  0x1e   :  { %2357 = vsyncadd [#allocation8], 4294967008 }
  0x1f   :  { %2358 = dma.done.wait [#allocation11], 1568  }
  0x20   :  { %2359 = vsyncadd [#allocation11], 4294965728 }
  0x21   :  { %2360 = dma.done.wait [#allocation14], 528  }
  0x22   :  { %2361 = vsyncadd [#allocation14], 4294966768 }
  0x23   :  { %2362 = dma.done.wait [#allocation17], 1024  }
  0x24   :  { %2363 = vsyncadd [#allocation17], 4294966272  ;;  %v2555_v0 = vld [vmem:[%s3194_s3 + $0x4] sm:$0xf]  ;;  %v2560_v1 = vld [vmem:[%s3194_s3] sm:$0xf] }
  0x25   :  { %v2565_v2 = vld [vmem:[%s3194_s3 + $0x8] sm:$0xf0]  ;;  %v2570_v3 = vld [vmem:[%s3194_s3 + $0x4] sm:$0xf0]  ;;  %v2575_v4 = vld [vmem:[%s3194_s3 + $0x14] sm:$0xf] }
  0x26   :  { %v2580_v5 = vld [vmem:[%s3194_s3 + $0x10] sm:$0xf]  ;;  %v2585_v6 = vld [vmem:[%s3194_s3 + $0x18] sm:$0xf0]  ;;  %v2590_v7 = vld [vmem:[%s3194_s3 + $0x14] sm:$0xf0] }
  0x27   :  { %v2595_v8 = vld [vmem:[%s3194_s3 + $0x24] sm:$0xf]  ;;  %v2600_v9 = vld [vmem:[%s3194_s3 + $0x20] sm:$0xf]  ;;  %v2605_v10 = vld [vmem:[%s3194_s3 + $0x28] sm:$0xf0] }
  0x28   :  { %v2610_v11 = vld [vmem:[%s3194_s3 + $0x24] sm:$0xf0]  ;;  %v2615_v12 = vld [vmem:[%s3194_s3 + $0x34] sm:$0xf]  ;;  %v2620_v13 = vld [vmem:[%s3194_s3 + $0x30] sm:$0xf] }
  0x29   :  { %v2625_v14 = vld [vmem:[%s3194_s3 + $0x38] sm:$0xf0]  ;;  %v2630_v15 = vld [vmem:[%s3194_s3 + $0x34] sm:$0xf0]  ;;  %v2632_v16 = vld [vmem:[#allocation9] sm:$0x1] }
  0x2a   :  { %v2634_v17 = vld [vmem:[#allocation9 + $0x1] sm:$0x1]  ;;  %v2636_v18 = vmov 0.0   ;;  %v2638_v19 = vmov 0.0   ;;  %v2640_v20 = vmov 0.0   ;;  %v2642_v21 = vmov 0.0  }
  0x2b   :  { %s2644_s19 = smov 0  }
  0x2c LB: > { %v1688_v22 = vor.u32 %v2630_v15, %v2620_v13  ;;  %v1692_v23 = vor.u32 %v2615_v12, %v2625_v14  ;;  %v1680_v24 = vor.u32 %v2610_v11, %v2600_v9  ;;  %v205_v25 = vpack.c.bf16 %v2380_v21, %v2380_v21  ;;  %s2430_s3 = smov 64   ;;  %s185_s21 = ssub.s32 7, %s2384_s19  ;;  %s2384_s19 = sphi %s2644_s19, %s180_s19   ;;  %v2380_v21 = vphi %v2642_v21, %v390_v21   ;;  %v2376_v20 = vphi %v2640_v20, %v391_v20   ;;  %v2372_v19 = vphi %v2638_v19, %v396_v19   ;;  %v2368_v18 = vphi %v2636_v18, %v397_v18  }
  0x2d   : > { %v206_v26 = vpack.c.bf16 %v2376_v20, %v2376_v20  ;;  %v1684_v27 = vor.u32 %v2595_v8, %v2605_v10  ;;  %v1672_v31 = vor.u32 %v2590_v7, %v2580_v5  ;;  %v1676_v32 = vor.u32 %v2575_v4, %v2585_v6  ;;  %s1660_s22 = sshll.u32 %s185_s21, 2  ;;  %s1659_s23 = sshll.u32 %s2384_s19, 2 }
  0x2e   : > { %264 = vmatpush.bf16.msra.mxu0 %v1688_v22  ;;  %277 = vmatpush.bf16.msra.mxu1 %v1692_v23  ;;  %v209_v28 = vunpack.c.l.b16 %v205_v25  ;;  %v1664_v33 = vor.u32 %v2570_v3, %v2560_v1  ;;  %v1668_v34 = vor.u32 %v2555_v0, %v2565_v2  ;;  %s196_s5 = scalar_lea.vmem [#allocation4], %s1660_s22  ;;  %s193_s24 = scalar_lea.vmem [#allocation4], %s1659_s23  ;;  %vm201_vm0 = vcmask 1043456  }
  0x2f   : > { %v210_v29 = vunpack.c.l.b16 %v206_v26  ;;  %v197_v35 = vld [vmem:[%s196_s5] sm:$0xf]  ;;  %vm214_vm1 = vcmask 261120   ;;  %vm257_vm2 = vcmask 523264   ;;  %v286_v42 = vperm.slane %v2632_v16, 0  ;;  %s1657_s4 = sshll.u32 %s2384_s19, 3 }
  0x30   : > { %v199_v36 = vunpack.c.l.b16 %v197_v35  ;;  %v194_v38 = vld [vmem:[%s193_s24] sm:$0xf]  ;;  %v288_v46 = vperm.slane %v2634_v17, 0  ;;  %v2431_v59 = vmov 0   ;;  %s2432_s25 = smov 32   ;;  %s187_s28 = scalar_lea.vmem %s3192_s1, %s1657_s4  ;;  %vm409_vm11 = vcmask 523520  }
  0x31   : > { %v211_v30 = vpack.c.b16 %v210_v29, %v209_v28  ;;  %2003 = vset.pattern.permute.xlu1 %v2431_v59  ;;  %2005 = vset.pattern.permute.xlu0 %v2431_v59  ;;  %s2704_s6 = sshll.u32 %s185_s21, 3  ;;  %s402_s9 = scalar_lea.vmem [#allocation2], %s1657_s4 }
  0x32   : > { %265 = vmatpush.bf16.msra.mxu0 %v1680_v24  ;;  %278 = vmatpush.bf16.msra.mxu1 %v1684_v27  ;;  %v200_v37 = vpack.c.b16 %v199_v36, %v199_v36  ;;  %s190_s8 = scalar_lea.vmem %s3192_s1, %s2704_s6  ;;  %s408_s14 = scalar_lea.vmem [#allocation2], %s2704_s6 }
  0x33   : > { %212 = vrot.lane.b32.xlu0 %v211_v30, %s2430_s3  ;;  %2004 = vset.pattern.permute.xlu2 %v2431_v59  ;;  %s180_s19 = sadd.s32 1, %s2384_s19  }
  0x34   : > { %v204_v39 = vsel %vm201_vm0, %v194_v38, %v200_v37  ;;  %p177_p0 = scmp.ge.s32.totalorder %s180_s19, 8  }
  0x35   :  { %v2756_v0 = vld [vmem:[#allocation10 + $0x28] sm:$0xf0] (%p177_p0)  ;;  %v2758_v1 = vld [vmem:[#allocation10 + $0x24] sm:$0xf0] (%p177_p0)  ;;  %v2760_v2 = vld [vmem:[#allocation10 + $0x34] sm:$0xf] (%p177_p0) }
  0x36   : > { %266 = vmatpush.bf16.msra.mxu0 %v1672_v31  ;;  %279 = vmatpush.bf16.msra.mxu1 %v1676_v32  ;;  %v2762_v3 = vld [vmem:[#allocation10 + $0x30] sm:$0xf] (%p177_p0)  ;;  %v2764_v4 = vld [vmem:[#allocation10 + $0x38] sm:$0xf0] (%p177_p0)  ;;  %v2766_v5 = vld [vmem:[#allocation10 + $0x34] sm:$0xf0] (%p177_p0) }
  0x37   :  { %v2768_v6 = vld [vmem:[#allocation10 + $0x44] sm:$0xf] (%p177_p0)  ;;  %v2770_v7 = vld [vmem:[#allocation10 + $0x40] sm:$0xf] (%p177_p0)  ;;  %v2772_v8 = vld [vmem:[#allocation10 + $0x48] sm:$0xf0] (%p177_p0) }
  0x38   :  { %v2774_v9 = vld [vmem:[#allocation10 + $0x44] sm:$0xf0] (%p177_p0)  ;;  %v2776_v10 = vld [vmem:[#allocation10 + $0x54] sm:$0xf] (%p177_p0)  ;;  %v2778_v11 = vld [vmem:[#allocation10 + $0x50] sm:$0xf] (%p177_p0) }
  0x39   :  { %v2780_v12 = vld [vmem:[#allocation10 + $0x58] sm:$0xf0] (%p177_p0)  ;;  %v2782_v13 = vld [vmem:[#allocation10 + $0x54] sm:$0xf0] (%p177_p0)  ;;  %v2784_v14 = vld [vmem:[#allocation12] sm:$0x1] (%p177_p0) }
  0x3a   : > { %267 = vmatpush.bf16.msra.mxu0 %v1664_v33  ;;  %280 = vmatpush.bf16.msra.mxu1 %v1668_v34  ;;  %v2786_v15 = vld [vmem:[#allocation12 + $0x1] sm:$0x1] (%p177_p0)  ;;  %v2788_v16 = vmov (%p177_p0), 0.0   ;;  %v2790_v17 = vmov (%p177_p0), 0.0   ;;  %s2796_s15 = smov (%p177_p0), 0  }
  0xa5   : > { %v213_v40 = vpop.permute.xlu0 %212 }
  0xa6   : > { %v216_v41 = vsel %vm214_vm1, %v204_v39, %v213_v40  ;;  %v188_v40 = vld [vmem:[%s187_s28] sm:$0xff] }
  0xa7   : > { %1693 = vmatmul.msk.bf16.vlgmr.msra.gmra.mxu0 %vm257_vm2, %v216_v41  ;;  %1694 = vmatmul.msk.bf16.vlgmr.msra.gmra.mxu1 %vm257_vm2, %v216_v41 }
 0x124   : > { %v269_v43 = vpop.f32.mrf.mxu0  ;;  %v282_v44 = vpop.f32.mrf.mxu1 }
 0x125   : > { %v287_v45 = vadd.f32 %v286_v42, %v269_v43  ;;  %v191_v42 = vld [vmem:[%s190_s8] sm:$0xff] }
 0x126   : > { %v377_v43 = vsub.f32 1.0, %v191_v42 }
 0x127   : > { %2006 = vtanh.f32 %v287_v45  ;;  %v1695_v52 = vmul.f32 -1.442695, %v287_v45 }
 0x12c   : > { %v271_v47 = vpop.f32.mrf.mxu0  ;;  %v283_v48 = vpop.f32.mrf.mxu1 }
 0x12d   : > { %v2007_v49 = vpop.eup %2006  ;;  %v289_v50 = vadd.f32 %v288_v46, %v283_v48 }
 0x12e   : > { %334 = vrot.lane.b32.xlu0 %v2007_v49, %s2430_s3 }
 0x12f   : > { %2008 = vtanh.f32 %v289_v50  ;;  %v1696_v53 = vmul.f32 -1.442695, %v289_v50 }
 0x130   : > { %2010 = vpow2.f32 %v1695_v52  ;;  %v376_v52 = vsub.f32 1.0, %v188_v40 }
 0x131   : > { %2012 = vpow2.f32 %v1696_v53 }
 0x135   : > { %v2009_v51 = vpop.eup %2008 }
 0x136   : > { %336 = vrot.lane.b32.xlu1 %v2009_v51, %s2430_s3  ;;  %v2011_v54 = vpop.eup %2010 }
 0x137   : > { %v296_v55 = vadd.f32 1.0, %v2011_v54  ;;  %v2013_v56 = vpop.eup %2012 }
 0x138   : > { %v297_v57 = vadd.f32 1.0, %v2013_v56 }
 0x139   : > { %2014 = vrcp.f32 %v296_v55  ;;  %v309_v25 = vand.u32 2147483648, %v296_v55  ;;  %vm303_vm4 = vweird.f32 %v296_v55  ;;  %v307_v26 = vand.u32 2147483647, %v296_v55 }
 0x13a   : > { %2016 = vrcp.f32 %v297_v57  ;;  %v324_v34 = vand.u32 2147483648, %v297_v57  ;;  %vm318_vm8 = vweird.f32 %v297_v57  ;;  %v322_v35 = vand.u32 2147483647, %v297_v57 }
 0x13b   : > { %v310_v29 = vor.u32 1.1754944e-38, %v309_v25  ;;  %vm308_vm6 = vcmp.eq.f32.partialorder %v307_v26, 8.507059e+37 }
 0x13c   : > { %v325_v37 = vor.u32 1.1754944e-38, %v324_v34  ;;  %vm323_vm10 = vcmp.eq.f32.partialorder %v322_v35, 8.507059e+37  ;;  %v2746_v34 = vld [vmem:[#allocation10 + $0x10] sm:$0xf] (%p177_p0)  ;;  %v2748_v35 = vld [vmem:[#allocation10 + $0x18] sm:$0xf0] (%p177_p0) }
 0x13f   : > { %v2015_v58 = vpop.eup %2014 }
 0x140   : > { %v299_v60 = vmul.f32 %v2015_v58, %v296_v55  ;;  %v2017_v62 = vpop.eup %2016  ;;  %vm304_vm3 = vweird.f32 %v2015_v58 }
 0x141   : > { %v314_v22 = vmul.f32 %v2017_v62, %v297_v57  ;;  %vm305_vm5 = vmor %vm303_vm4, %vm304_vm3  ;;  %vm319_vm7 = vweird.f32 %v2017_v62 }
 0x142   : > { %v300_v61 = vsub.f32 1.0, %v299_v60  ;;  %vm320_vm9 = vmor %vm318_vm8, %vm319_vm7 }
 0x143   : > { %v315_v24 = vsub.f32 1.0, %v314_v22 }
 0x144   : > { %v301_v63 = vmul.f32 %v2015_v58, %v300_v61 }
 0x145   : > { %v316_v28 = vmul.f32 %v2017_v62, %v315_v24 }
 0x146   : > { %v302_v23 = vadd.f32 %v2015_v58, %v301_v63 }
 0x147   : > { %v317_v33 = vadd.f32 %v2017_v62, %v316_v28 }
 0x148   : > { %v306_v27 = vsel %vm305_vm5, %v2015_v58, %v302_v23 }
 0x149   : > { %v311_v31 = vsel %vm308_vm6, %v310_v29, %v306_v27  ;;  %v321_v36 = vsel %vm320_vm9, %v2017_v62, %v317_v33  ;;  %v2736_v29 = vld [vmem:[#allocation10 + $0x4] sm:$0xf] (%p177_p0)  ;;  %v2744_v33 = vld [vmem:[#allocation10 + $0x14] sm:$0xf] (%p177_p0) }
 0x14a   : > { %v326_v39 = vsel %vm323_vm10, %v325_v37, %v321_v36  ;;  %v330_v48 = vmul.f32 %v2372_v19, %v311_v31  ;;  %v2750_v36 = vld [vmem:[#allocation10 + $0x14] sm:$0xf0] (%p177_p0)  ;;  %v2754_v37 = vld [vmem:[#allocation10 + $0x20] sm:$0xf] (%p177_p0) }
 0x14b   : > { %v331_v44 = vmul.f32 %v2368_v18, %v326_v39 }
 0x1a0   : > { %v335_v30 = vpop.permute.xlu0 %334 }
 0x1a1   : > { %v340_v32 = vmul.f32 %v335_v30, %v311_v31  ;;  %v2738_v30 = vld [vmem:[#allocation10] sm:$0xf] (%p177_p0) }
 0x1a3   : > { %344 = vrot.lane.b32.xlu1 %v340_v32, %s2432_s25  ;;  %v2742_v32 = vld [vmem:[#allocation10 + $0x4] sm:$0xf0] (%p177_p0) }
 0x1a8   : > { %v337_v38 = vpop.permute.xlu1 %336 }
 0x1a9   : > { %v341_v41 = vmul.f32 %v337_v38, %v326_v39 }
 0x1ab   : > { %346 = vrot.lane.b32.xlu2 %v341_v41, %s2432_s25  ;;  %366 = vperm.xlu1 %2003, %v188_v40  }
 0x1b3   : > { %385 = vperm.xlu1 %2003, %v377_v43  }
 0x205   : > { %v347_v45 = vpop.permute.xlu2 %346 }
 0x206   : > { %v351_v46 = vadd.f32 %v347_v45, %v331_v44 }
 0x208   : > { %2018 = vtanh.f32 %v351_v46 }
 0x20e   : > { %v2019_v47 = vpop.eup %2018 }
 0x20f   : > { %358 = vrot.lane.b32.xlu0 %v2019_v47, %s2430_s3 }
 0x215   : > { %v345_v49 = vpop.permute.xlu1 %344 }
 0x216   : > { %v350_v50 = vadd.f32 %v345_v49, %v330_v48 }
 0x217   : > { %371 = vperm.xlu0 %2005, %v191_v42  }
 0x218   : > { %2020 = vtanh.f32 %v350_v50 }
 0x21d   : > { %v367_v55 = vpop.permute.xlu1 %366 }
 0x21e   : > { %v2021_v51 = vpop.eup %2020  ;;  %v392_v58 = vmul.f32 %v367_v55, %v350_v50 }
 0x21f   : > { %356 = vrot.lane.b32.xlu2 %v2021_v51, %s2430_s3 }
 0x225   : > { %v386_v62 = vpop.permute.xlu1 %385 }
 0x226   : > { %v389_v23 = vmul.f32 %v2376_v20, %v386_v62  ;;  %v395_v24 = vmul.f32 %v2368_v18, %v386_v62 }
 0x227   : > { %380 = vperm.xlu2 %2004, %v376_v52  }
 0x279   : > { %v357_v53 = vpop.permute.xlu2 %356 }
 0x27a   : > { %v362_v54 = vmul.f32 %v357_v53, %v311_v31  ;;  %v2740_v31 = vld [vmem:[#allocation10 + $0x8] sm:$0xf0] (%p177_p0) }
 0x27c   : > { %v374_v59 = vmul.f32 %v367_v55, %v362_v54 }
 0x281   : > { %v381_v56 = vpop.permute.xlu2 %380  ;;  %v359_v57 = vpop.permute.xlu0 %358 }
 0x282   : > { %v388_v60 = vmul.f32 %v2380_v21, %v381_v56  ;;  %v394_v61 = vmul.f32 %v2372_v19, %v381_v56  ;;  %v363_v63 = vmul.f32 %v359_v57, %v326_v39 }
 0x284   : > { %v390_v21 = vadd.f32 %v388_v60, %v374_v59   ;;  %v396_v19 = vadd.f32 %v394_v61, %v392_v58  }
 0x285   :  { %v2794_v19 = vmov (%p177_p0), 0.0  }
 0x286   : > { %399 = vrot.lane.b32.xlu2 %v390_v21, %s2432_s25  ;;  %v2752_v21 = vld [vmem:[#allocation10 + $0x24] sm:$0xf] (%p177_p0) }
 0x289   : > { %v372_v22 = vpop.permute.xlu0 %371 }
 0x28a   : > { %v375_v25 = vmul.f32 %v372_v22, %v363_v63  ;;  %v393_v26 = vmul.f32 %v372_v22, %v351_v46 }
 0x28c   : > { %v391_v20 = vadd.f32 %v389_v23, %v375_v25   ;;  %v397_v18 = vadd.f32 %v395_v24, %v393_v26  }
 0x28d   :  { %v2792_v18 = vmov (%p177_p0), 0.0  }
 0x28e   : > { %405 = vrot.lane.b32.xlu1 %v391_v20, %s2430_s3 }
 0x2e0   : > { %v400_v27 = vpop.permute.xlu2 %399 }
 0x2e1   : > { %403 = vst.msk [vmem:[%s402_s9] sm:$0xff] %vm214_vm1, %v400_v27 }
 0x2fd   :  { %179 = sbr.rel (!%p177_p0) target bundleno = 44 (0x2c), region = 139 }
 0x300   : > { %v406_v28 = vpop.permute.xlu1 %405 }
 0x301   : > { %410 = vst.msk [vmem:[%s408_s14] sm:$0xff] %vm409_vm11, %v406_v28 }
 0x302 LB: > { %v1742_v20 = vor.u32 %v2782_v13, %v2778_v11  ;;  %v1746_v38 = vor.u32 %v2776_v10, %v2780_v12  ;;  %v2022_v39 = vpack.i.bf16 %v2396_v18, %v2400_v19  ;;  %v1734_v40 = vor.u32 %v2774_v9, %v2770_v7  ;;  %s2433_s16 = smov 96   ;;  %s435_s17 = ssub.s32 7, %s2404_s15  ;;  %s2404_s15 = sphi %s2796_s15, %s430_s15   ;;  %v2400_v19 = vphi %v2794_v19, %v3208_v19   ;;  %v2396_v18 = vphi %v2792_v18, %v3207_v18   ;;  %v2392_v17 = vphi %v2790_v17, %v3206_v17   ;;  %v2388_v16 = vphi %v2788_v16, %v3205_v16  }
 0x303   : > { %v1738_v41 = vor.u32 %v2768_v6, %v2772_v8  ;;  %v1726_v42 = vor.u32 %v2766_v5, %v2762_v3  ;;  %v1730_v43 = vor.u32 %v2760_v2, %v2764_v4  ;;  %v1718_v44 = vor.u32 %v2758_v1, %v2754_v37  ;;  %s2841_s7 = sshll.u32 %s2404_s15, 3  ;;  %s2843_s18 = sshll.u32 %s435_s17, 3 }
 0x304   : > { %524 = vmatpush.bf16.msra.mxu0 %v1742_v20  ;;  %537 = vmatpush.bf16.msra.mxu1 %v1746_v38  ;;  %v1722_v45 = vor.u32 %v2752_v21, %v2756_v0  ;;  %v1710_v46 = vor.u32 %v2750_v36, %v2746_v34  ;;  %v1714_v47 = vor.u32 %v2744_v33, %v2748_v35  ;;  %s442_s0 = scalar_lea.vmem [#allocation2], %s2841_s7  ;;  %s444_s19 = scalar_lea.vmem [#allocation2], %s2843_s18  ;;  %vm518_vm12 = vcmask 785408  }
 0x305   : > { %2023 = vrot.lane.b32.xlu0 %v2022_v39, %s2433_s16  ;;  %v1702_v48 = vor.u32 %v2742_v32, %v2738_v30  ;;  %v1706_v49 = vor.u32 %v2736_v29, %v2740_v31  ;;  %v548_v58 = vperm.slane %v2784_v14, 0  ;;  %v550_v62 = vperm.slane %v2786_v15, 0  ;;  %s2434_s3 = smov 64   ;;  %s2436_s21 = smov 32  }
 0x306   : > { %s437_s23 = scalar_lea.vmem %s3192_s1, %s2841_s7  ;;  %s440_s25 = scalar_lea.vmem %s3192_s1, %s2843_s18 }
 0x307   : > { %s680_s26 = scalar_lea.vmem [#allocation3], %s2841_s7  ;;  %s687_s27 = scalar_lea.vmem [#allocation3], %s2843_s18 }
 0x308   : > { %525 = vmatpush.bf16.msra.mxu0 %v1734_v40  ;;  %538 = vmatpush.bf16.msra.mxu1 %v1738_v41  ;;  %v443_v50 = vld [vmem:[%s442_s0] sm:$0xff]  ;;  %v2435_v41 = vmov 0   ;;  %s430_s15 = sadd.s32 1, %s2404_s15  }
 0x309   : > { %v445_v51 = vld [vmem:[%s444_s19] sm:$0xff]  ;;  %2027 = vset.pattern.permute.xlu1 %v2435_v41  ;;  %2028 = vset.pattern.permute.xlu2 %v2435_v41  ;;  %p427_p1 = scmp.ge.s32.totalorder %s430_s15, 8  }
 0x30a   : > { %2029 = vset.pattern.permute.xlu0 %v2435_v41  ;;  %vm701_vm8 = vcmask (%p427_p1), 1047556   ;;  %v2897_v34 = vld [vmem:[#allocation13] sm:$0xf] (%p427_p1)  ;;  %v2899_v35 = vld [vmem:[#allocation13] sm:$0xf0] (%p427_p1) }
 0x30b   :  { %v2901_v36 = vld [vmem:[#allocation13 + $0x8] sm:$0xf] (%p427_p1)  ;;  %v2905_v2 = vld [vmem:[#allocation13 + $0x8] sm:$0xf0] (%p427_p1)  ;;  %v2907_v3 = vld [vmem:[#allocation13 + $0x10] sm:$0xf] (%p427_p1) }
 0x30c   : > { %526 = vmatpush.bf16.msra.mxu0 %v1726_v42  ;;  %539 = vmatpush.bf16.msra.mxu1 %v1730_v43  ;;  %v2909_v8 = vld [vmem:[#allocation13 + $0x10] sm:$0xf0] (%p427_p1)  ;;  %v2911_v9 = vld [vmem:[#allocation13 + $0x18] sm:$0xf] (%p427_p1)  ;;  %v2913_v10 = vld [vmem:[#allocation13 + $0x18] sm:$0xf0] (%p427_p1) }
 0x30d   :  { %v2918_v15 = vld [vmem:[#allocation15] sm:$0x1] (%p427_p1) }
 0x310   : > { %527 = vmatpush.bf16.msra.mxu0 %v1718_v44  ;;  %540 = vmatpush.bf16.msra.mxu1 %v1722_v45 }
 0x314   : > { %528 = vmatpush.bf16.msra.mxu0 %v1710_v46  ;;  %541 = vmatpush.bf16.msra.mxu1 %v1714_v47 }
 0x318   : > { %529 = vmatpush.bf16.msra.mxu0 %v1702_v48  ;;  %542 = vmatpush.bf16.msra.mxu1 %v1706_v49 }
 0x377   : > { %v2024_v52 = vpop.permute.xlu0 %2023 }
 0x378   : > { %v2026_v53 = vunpack.i.h.bf16 %v2024_v52  ;;  %v2025_v54 = vunpack.i.l.bf16 %v2024_v52 }
 0x37a   : > { %v456_v55 = vsel %vm257_vm2, %v445_v51, %v2026_v53  ;;  %v455_v56 = vsel %vm257_vm2, %v443_v50, %v2025_v54 }
 0x37b   : > { %v457_v57 = vpack.c.bf16 %v456_v55, %v455_v56 }
 0x37d   : > { %1747 = vmatmul.msk.bf16.vlgmr.msra.gmra.mxu0 %vm518_vm12, %v457_v57  ;;  %1748 = vmatmul.msk.bf16.vlgmr.msra.gmra.mxu1 %vm518_vm12, %v457_v57 }
 0x3fa   : > { %v531_v59 = vpop.f32.mrf.mxu0  ;;  %v544_v60 = vpop.f32.mrf.mxu1 }
 0x3fb   : > { %v549_v61 = vadd.f32 %v548_v58, %v531_v59 }
 0x3fd   : > { %2030 = vtanh.f32 %v549_v61  ;;  %v1749_v26 = vmul.f32 -1.442695, %v549_v61 }
 0x402   : > { %v533_v63 = vpop.f32.mrf.mxu0  ;;  %v545_v22 = vpop.f32.mrf.mxu1 }
 0x403   : > { %v2031_v23 = vpop.eup %2030  ;;  %v551_v24 = vadd.f32 %v550_v62, %v545_v22  ;;  %v438_v22 = vld [vmem:[%s437_s23] sm:$0xff] }
 0x404   : > { %596 = vrot.lane.b32.xlu0 %v2031_v23, %s2434_s3 }
 0x405   : > { %2032 = vtanh.f32 %v551_v24  ;;  %v1750_v27 = vmul.f32 -1.442695, %v551_v24  ;;  %v638_v24 = vsub.f32 1.0, %v438_v22 }
 0x406   : > { %2034 = vpow2.f32 %v1749_v26 }
 0x407   : > { %2036 = vpow2.f32 %v1750_v27 }
 0x40b   : > { %v2033_v25 = vpop.eup %2032 }
 0x40c   : > { %598 = vrot.lane.b32.xlu1 %v2033_v25, %s2434_s3  ;;  %v2035_v28 = vpop.eup %2034  ;;  %v441_v25 = vld [vmem:[%s440_s25] sm:$0xff] }
 0x40d   : > { %v558_v20 = vadd.f32 1.0, %v2035_v28  ;;  %v2037_v38 = vpop.eup %2036  ;;  %v639_v26 = vsub.f32 1.0, %v441_v25 }
 0x40e   : > { %v559_v39 = vadd.f32 1.0, %v2037_v38 }
 0x40f   : > { %2038 = vrcp.f32 %v558_v20  ;;  %v571_v49 = vand.u32 2147483648, %v558_v20  ;;  %vm565_vm14 = vweird.f32 %v558_v20  ;;  %v569_v50 = vand.u32 2147483647, %v558_v20 }
 0x410   : > { %2040 = vrcp.f32 %v559_v39  ;;  %v586_v58 = vand.u32 2147483648, %v559_v39  ;;  %vm580_vm5 = vweird.f32 %v559_v39  ;;  %v584_v59 = vand.u32 2147483647, %v559_v39 }
 0x411   : > { %v572_v53 = vor.u32 1.1754944e-38, %v571_v49  ;;  %vm570_vm3 = vcmp.eq.f32.partialorder %v569_v50, 8.507059e+37  ;;  %v663_v27 = vmul.f32 0.0, %v639_v26  ;;  %v662_v49 = vmul.f32 0.0, %v638_v24 }
 0x412   : > { %v587_v61 = vor.u32 1.1754944e-38, %v586_v58  ;;  %vm585_vm7 = vcmp.eq.f32.partialorder %v584_v59, 8.507059e+37 }
 0x415   : > { %v2039_v40 = vpop.eup %2038 }
 0x416   : > { %v561_v42 = vmul.f32 %v2039_v40, %v558_v20  ;;  %v2041_v44 = vpop.eup %2040  ;;  %vm566_vm13 = vweird.f32 %v2039_v40 }
 0x417   : > { %v576_v46 = vmul.f32 %v2041_v44, %v559_v39  ;;  %vm567_vm15 = vmor %vm565_vm14, %vm566_vm13  ;;  %vm581_vm4 = vweird.f32 %v2041_v44 }
 0x418   : > { %v562_v43 = vsub.f32 1.0, %v561_v42  ;;  %vm582_vm6 = vmor %vm580_vm5, %vm581_vm4 }
 0x419   : > { %v577_v48 = vsub.f32 1.0, %v576_v46 }
 0x41a   : > { %v563_v45 = vmul.f32 %v2039_v40, %v562_v43 }
 0x41b   : > { %v578_v52 = vmul.f32 %v2041_v44, %v577_v48 }
 0x41c   : > { %v564_v47 = vadd.f32 %v2039_v40, %v563_v45 }
 0x41d   : > { %v579_v57 = vadd.f32 %v2041_v44, %v578_v52 }
 0x41e   : > { %v568_v51 = vsel %vm567_vm15, %v2039_v40, %v564_v47 }
 0x41f   : > { %v573_v55 = vsel %vm570_vm3, %v572_v53, %v568_v51  ;;  %v583_v60 = vsel %vm582_vm6, %v2041_v44, %v579_v57 }
 0x420   : > { %v588_v63 = vsel %vm585_vm7, %v587_v61, %v583_v60  ;;  %v592_v40 = vmul.f32 %v2392_v17, %v573_v55 }
 0x421   : > { %v593_v28 = vmul.f32 %v2388_v16, %v588_v63 }
 0x476   : > { %v597_v54 = vpop.permute.xlu0 %596 }
 0x477   : > { %v602_v56 = vmul.f32 %v597_v54, %v573_v55 }
 0x479   : > { %606 = vrot.lane.b32.xlu1 %v602_v56, %s2436_s21 }
 0x47e   : > { %v599_v62 = vpop.permute.xlu1 %598 }
 0x47f   : > { %v603_v23 = vmul.f32 %v599_v62, %v588_v63 }
 0x481   : > { %608 = vrot.lane.b32.xlu2 %v603_v23, %s2436_s21  ;;  %628 = vperm.xlu1 %2027, %v438_v22  }
 0x489   : > { %642 = vperm.xlu2 %2028, %v638_v24   ;;  %647 = vperm.xlu1 %2027, %v639_v26  }
 0x491   : > { %671 = vperm.xlu1 %2027, %v663_v27  }
 0x4db   : > { %v609_v20 = vpop.permute.xlu2 %608 }
 0x4dc   : > { %v613_v38 = vadd.f32 %v609_v20, %v593_v28 }
 0x4de   : > { %2042 = vtanh.f32 %v613_v38 }
 0x4e3   : > { %v643_v43 = vpop.permute.xlu2 %642 }
 0x4e4   : > { %v2043_v39 = vpop.eup %2042  ;;  %v656_v44 = vmul.f32 %v2392_v17, %v643_v43  ;;  %v650_v51 = vmul.f32 %v2400_v19, %v643_v43 }
 0x4e5   : > { %620 = vrot.lane.b32.xlu0 %v2043_v39, %s2434_s3 }
 0x4eb   : > { %v607_v41 = vpop.permute.xlu1 %606 }
 0x4ec   : > { %v612_v42 = vadd.f32 %v607_v41, %v592_v40 }
 0x4ed   : > { %633 = vperm.xlu0 %2029, %v441_v25  }
 0x4ee   : > { %2044 = vtanh.f32 %v612_v42 }
 0x4f3   : > { %v629_v45 = vpop.permute.xlu1 %628 }
 0x4f4   : > { %v2045_v46 = vpop.eup %2044  ;;  %v654_v47 = vmul.f32 %v629_v45, %v612_v42 }
 0x4f5   : > { %618 = vrot.lane.b32.xlu2 %v2045_v46, %s2434_s3 }
 0x4f6   : > { %v658_v48 = vadd.f32 %v656_v44, %v654_v47   ;;  %v2437_v47 = vmov (%p427_p1), 1983009808  }
 0x4fb   : > { %v648_v17 = vpop.permute.xlu1 %647 }
 0x4fc   : > { %v651_v62 = vmul.f32 %v2396_v18, %v648_v17  ;;  %v657_v22 = vmul.f32 %v2388_v16, %v648_v17  ;;  %v3206_v17 = vmov %v658_v48 }
 0x4fd   : > { %666 = vperm.xlu2 %2028, %v662_v49   ;;  %v706_v49 = vunpack.c.l.s4 (%p427_p1), %v2437_v47  ;;  %v2926_v17 = vld [vmem:[#allocation16 + $0x8] sm:$0xf0] (%p427_p1)  ;;  %v2944_v47 = vld [vmem:[#allocation16 + $0x20] sm:$0xf0] (%p427_p1) }
 0x4ff   :  { %v707_v32 = vunpack.c.0.s8 (%p427_p1), %v706_v49 }
 0x503   : > { %v672_v26 = vpop.permute.xlu1 %671 }
 0x54f   : > { %v619_v50 = vpop.permute.xlu2 %618 }
 0x550   : > { %v624_v52 = vmul.f32 %v619_v50, %v573_v55 }
 0x552   : > { %v636_v53 = vmul.f32 %v629_v45, %v624_v52 }
 0x554   : > { %v652_v54 = vadd.f32 %v650_v51, %v636_v53  }
 0x556   : > { %v660_v56 = vmul.f32 %v652_v54, %v629_v45 }
 0x557   : > { %v667_v57 = vpop.permute.xlu2 %666  ;;  %v621_v58 = vpop.permute.xlu0 %620 }
 0x558   : > { %v674_v59 = vadd.f32 %v667_v57, %v660_v56  ;;  %v625_v60 = vmul.f32 %v621_v58, %v588_v63 }
 0x55a   : > { %677 = vrot.lane.b32.xlu2 %v674_v59, %s2436_s21  ;;  %v2924_v59 = vld [vmem:[#allocation16 + $0x8] sm:$0xf] (%p427_p1) }
 0x55f   : > { %v634_v61 = vpop.permute.xlu0 %633 }
 0x560   : > { %v637_v23 = vmul.f32 %v634_v61, %v625_v60  ;;  %v655_v19 = vmul.f32 %v634_v61, %v613_v38 }
 0x562   : > { %v653_v55 = vadd.f32 %v651_v62, %v637_v23   ;;  %v659_v24 = vadd.f32 %v657_v22, %v655_v19   ;;  %v3208_v19 = vmov %v652_v54  ;;  %v2438_v23 = vmov (%p427_p1), 1934713408  }
 0x563   :  { %v754_v19 = vunpack.c.l.s4 (%p427_p1), %v2438_v23 }
 0x564   : > { %v661_v25 = vmul.f32 %v653_v55, %v634_v61  ;;  %v3205_v16 = vmov %v659_v24  ;;  %v3207_v18 = vmov %v653_v55  ;;  %v2890_v20 = vadd.f32 (%p427_p1), %v653_v55, %v652_v54  }
 0x565   :  { %v2892_v38 = vadd.f32 (%p427_p1), %v659_v24, %v658_v48   ;;  %v2920_v16 = vld [vmem:[#allocation16] sm:$0xf] (%p427_p1)  ;;  %v2922_v18 = vld [vmem:[#allocation16] sm:$0xf0] (%p427_p1) }
 0x566   : > { %v675_v27 = vadd.f32 %v672_v26, %v661_v25  ;;  %v2929_v25 = vld [vmem:[#allocation16 + $0x10] sm:$0xf] (%p427_p1)  ;;  %v2931_v26 = vld [vmem:[#allocation16 + $0x10] sm:$0xf0] (%p427_p1) }
 0x568   : > { %684 = vrot.lane.b32.xlu0 %v675_v27, %s2434_s3 }
 0x5b4   : > { %v678_v28 = vpop.permute.xlu2 %677 }
 0x5b5   : > { %682 = vst.msk [vmem:[%s680_s26] sm:$0xff] %vm214_vm1, %v678_v28 }
 0x5d7   :  { %429 = sbr.rel (!%p427_p1) target bundleno = 770 (0x302), region = 150 }
 0x5da   : > { %v685_v63 = vpop.permute.xlu0 %684 }
 0x5db   : > { %689 = vst.msk [vmem:[%s687_s27] sm:$0xff] %vm409_vm11, %v685_v63 }
 0x5e2   :  { %v692_v39 = vld [vmem:[#allocation3] sm:$0xff]  ;;  %v693_v40 = vld [vmem:[#allocation3 + $0x8] sm:$0xff]  ;;  %v694_v41 = vld [vmem:[#allocation3 + $0x10] sm:$0xff] }
 0x5e3   :  { %v695_v42 = vld [vmem:[#allocation3 + $0x18] sm:$0xff]  ;;  %v696_v43 = vld [vmem:[#allocation3 + $0x20] sm:$0xff]  ;;  %v697_v44 = vld [vmem:[#allocation3 + $0x28] sm:$0xff]  ;;  %v700_v45 = vrot.slane %v694_v41, 4  ;;  %v703_v46 = vrot.slane %v692_v39, 4  ;;  %v715_v50 = vrot.slane %v693_v40, 4 }
 0x5e4   :  { %v698_v51 = vld [vmem:[#allocation3 + $0x30] sm:$0xff]  ;;  %v699_v52 = vld [vmem:[#allocation3 + $0x38] sm:$0xff]  ;;  %v713_v53 = vrot.slane %v695_v42, 4  ;;  %v727_v56 = vrot.slane %v696_v43, 4  ;;  %v739_v29 = vrot.slane %v697_v44, 4 }
 0x5e5   :  { %v702_v30 = vsel %vm701_vm8, %v700_v45, %v692_v39  ;;  %v704_v31 = vsel %vm701_vm8, %v694_v41, %v703_v46  ;;  %v716_v33 = vsel %vm701_vm8, %v695_v42, %v715_v50  ;;  %v725_v37 = vrot.slane %v698_v51, 4  ;;  %v2938_v41 = vld [vmem:[#allocation16 + $0x18] sm:$0xf0]  ;;  %v2942_v46 = vld [vmem:[#allocation16 + $0x20] sm:$0xf] }
 0x5e6   :  { %v714_v21 = vsel %vm701_vm8, %v713_v53, %v693_v40  ;;  %v728_v0 = vsel %vm701_vm8, %v698_v51, %v727_v56  ;;  %v737_v1 = vrot.slane %v699_v52, 4  ;;  %v708_v4 = vperm.slane %v702_v30, %v707_v32  ;;  %v2936_v40 = vld [vmem:[#allocation16 + $0x18] sm:$0xf]  ;;  %v2947_v50 = vld [vmem:[#allocation16 + $0x28] sm:$0xf] }
 0x5e7   :  { %v712_v5 = vperm.slane %v704_v31, %v707_v32  ;;  %v720_v6 = vperm.slane %v714_v21, %v707_v32  ;;  %v724_v7 = vperm.slane %v716_v33, %v707_v32  ;;  %v726_v11 = vsel %vm701_vm8, %v725_v37, %v696_v43  ;;  %v2949_v51 = vld [vmem:[#allocation16 + $0x28] sm:$0xf0]  ;;  %v2953_v31 = vld [vmem:[#allocation16 + $0x30] sm:$0xf0]  ;;  %v2957_v33 = vld [vmem:[#allocation16 + $0x38] sm:$0xf0] }
 0x5e8   :  { %v736_v12 = vperm.slane %v728_v0, %v707_v32  ;;  %v738_v13 = vsel %vm701_vm8, %v737_v1, %v697_v44  ;;  %v740_v14 = vsel %vm701_vm8, %v699_v52, %v739_v29  ;;  %v732_v48 = vperm.slane %v726_v11, %v707_v32  ;;  %v2951_v52 = vld [vmem:[#allocation16 + $0x30] sm:$0xf] }
 0x5e9   :  { %v744_v54 = vperm.slane %v738_v13, %v707_v32  ;;  %v748_v57 = vperm.slane %v740_v14, %v707_v32  ;;  %v749_v58 = vrot.slane %v720_v6, 4  ;;  %v751_v60 = vrot.slane %v708_v4, 4  ;;  %v2955_v32 = vld [vmem:[#allocation16 + $0x38] sm:$0xf]  ;;  %v2978_v14 = vld [vmem:[%s3202_s11 + $0x8] sm:$0xf] }
 0x5ea   :  { %v761_v61 = vrot.slane %v724_v7, 4  ;;  %v763_v62 = vrot.slane %v712_v5, 4  ;;  %v775_v24 = vrot.slane %v732_v48, 4  ;;  %v755_v42 = vunpack.c.0.s8 %v754_v19  ;;  %v2991_v19 = vld [vmem:[%s3203_s12] sm:$0x1] }
 0x5eb   :  { %v750_v22 = vsel %vm701_vm8, %v749_v58, %v708_v4  ;;  %v773_v55 = vrot.slane %v744_v54, 4  ;;  %v752_v27 = vsel %vm701_vm8, %v720_v6, %v751_v60  ;;  %v785_v39 = vrot.slane %v748_v57, 4  ;;  %v2963_v4 = vld [vmem:[%s3201_s10] sm:$0x1]  ;;  %v2973_v6 = vld [vmem:[%s3202_s11] sm:$0xf0] }
 0x5ec   :  { %v762_v28 = vsel %vm701_vm8, %v761_v61, %v712_v5  ;;  %v764_v63 = vsel %vm701_vm8, %v724_v7, %v763_v62  ;;  %v776_v44 = vsel %vm701_vm8, %v744_v54, %v775_v24  ;;  %v787_v45 = vrot.slane %v736_v12, 4  ;;  %v2968_v5 = vld [vmem:[%s3202_s11] sm:$0xf]  ;;  %v2983_v60 = vld [vmem:[%s3202_s11 + $0x8] sm:$0xf0]  ;;  %s3020_s11 = smov 0  }
 0x5ed   :  { %v774_v43 = vsel %vm701_vm8, %v773_v55, %v732_v48  ;;  %v786_v49 = vsel %vm701_vm8, %v785_v39, %v736_v12  ;;  %v756_v53 = vperm.slane %v750_v22, %v755_v42  ;;  %v760_v56 = vperm.slane %v752_v27, %v755_v42 }
 0x5ee   :  { %v768_v29 = vperm.slane %v762_v28, %v755_v42  ;;  %v772_v30 = vperm.slane %v764_v63, %v755_v42  ;;  %v780_v21 = vperm.slane %v774_v43, %v755_v42  ;;  %v784_v37 = vperm.slane %v776_v44, %v755_v42 }
 0x5ef   :  { %v788_v0 = vsel %vm701_vm8, %v748_v57, %v787_v45  ;;  %v792_v1 = vperm.slane %v786_v49, %v755_v42  ;;  %v799_v11 = vrot.slane %v756_v53, 4  ;;  %v803_v12 = vrot.slane %v760_v56, 4 }
 0x5f0   :  { %v796_v7 = vperm.slane %v788_v0, %v755_v42  ;;  %v807_v13 = vrot.slane %v768_v29, 4  ;;  %v797_v48 = vrot.slane %v780_v21, 4  ;;  %v801_v54 = vrot.slane %v784_v37, 4 }
 0x5f1   :  { %v805_v57 = vrot.slane %v792_v1, 4  ;;  %v811_v58 = vrot.slane %v772_v30, 4  ;;  %v800_v61 = vsel %vm701_vm8, %v780_v21, %v799_v11  ;;  %v804_v62 = vsel %vm701_vm8, %v784_v37, %v803_v12 }
 0x5f2   :  { %v808_v22 = vsel %vm701_vm8, %v792_v1, %v807_v13  ;;  %v809_v23 = vrot.slane %v796_v7, 4  ;;  %v798_v55 = vsel %vm701_vm8, %v797_v48, %v756_v53  ;;  %v802_v24 = vsel %vm701_vm8, %v801_v54, %v760_v56 }
 0x5f3   :  { %v806_v27 = vsel %vm701_vm8, %v805_v57, %v768_v29  ;;  %v812_v28 = vsel %vm701_vm8, %v796_v7, %v811_v58  ;;  %v2998_v39 = vpack.c.bf16 %v798_v55, %v798_v55  ;;  %v3000_v42 = vpack.c.bf16 %v800_v61, %v800_v61 }
 0x5f4   :  { %v810_v63 = vsel %vm701_vm8, %v809_v23, %v772_v30  ;;  %v3002_v43 = vpack.c.bf16 %v802_v24, %v802_v24  ;;  %v3004_v44 = vpack.c.bf16 %v804_v62, %v804_v62  ;;  %v3006_v45 = vpack.c.bf16 %v806_v27, %v806_v27 }
 0x5f5   :  { %v3008_v49 = vpack.c.bf16 %v808_v22, %v808_v22  ;;  %v3010_v53 = vpack.c.bf16 %v810_v63, %v810_v63  ;;  %v3012_v56 = vpack.c.bf16 %v812_v28, %v812_v28 }
 0x5f6 LB: > { %v1766_v29 = vor.u32 %v2913_v10, %v2911_v9  ;;  %s2439_s12 = smov 32   ;;  %v1762_v30 = vor.u32 %v2909_v8, %v2907_v3  ;;  %v1758_v21 = vor.u32 %v2905_v2, %v2901_v36  ;;  %v1754_v37 = vor.u32 %v2899_v35, %v2897_v34  ;;  %s1788_s7 = sshll.u32 %s2416_s11, 2  ;;  %s2416_s11 = sphi %s3020_s11, %s857_s11   ;;  %v2412_v20 = vphi %v2890_v20, %v1522_v20   ;;  %v2408_v38 = vphi %v2892_v38, %v1516_v38  }
 0x5f7   : > { %861 = vrot.lane.b32.xlu0 %v2412_v20, %s2439_s12  ;;  %v966_v11 = vsel %vm257_vm2, %v3000_v42, 0  ;;  %v945_v12 = vsel %vm257_vm2, %v2998_v39, 0  ;;  %v987_v13 = vsel %vm257_vm2, %v3002_v43, 0  ;;  %v1029_v48 = vsel %vm257_vm2, %v3006_v45, 0  ;;  %s1351_s18 = scalar_lea.vmem [#allocation7], %s1788_s7  ;;  %s2440_s0 = smov 64  }
 0x5f8   : > { %902 = vmatpush.bf16.msra.mxu0 %v1766_v29  ;;  %954 = vmatpush.bf16.xpose.msra.mxu1 %v945_v12  ;;  %v1008_v54 = vsel %vm257_vm2, %v3004_v44, 0  ;;  %v1050_v57 = vsel %vm257_vm2, %v3008_v49, 0  ;;  %v1071_v58 = vsel %vm257_vm2, %v3010_v53, 0  ;;  %v868_v61 = vperm.slane %v2918_v15, 0  ;;  %s2441_s19 = smov 96   ;;  %s1839_s3 = sshll.u32 %s2416_s11, 3 }
 0x5f9   : > { %996 = vmatpush.bf16.xpose.msra.mxu3 %v987_v13  ;;  %1038 = vmatpush.bf16.xpose.msra.mxu2 %v1029_v48  ;;  %vm914_vm9 = vcmask 1040384   ;;  %vm919_vm10 = vcmask 1041409   ;;  %vm923_vm11 = vcmask 1042434   ;;  %vm927_vm13 = vcmask 1043459   ;;  %s1559_s21 = scalar_lea.vmem [#allocation18], %s1839_s3  ;;  %s857_s11 = sadd.s32 1, %s2416_s11  }
 0x5fa   : > { %vm1107_vm14 = vcmask 57344   ;;  %vm1204_vm15 = vcmask 64512   ;;  %vm1401_vm3 = vcmask 1044484   ;;  %vm1404_vm4 = vcmask 1045509   ;;  %p854_p2 = scmp.ge.s32.totalorder %s857_s11, 4  }
 0x5fb   : > { %vm1407_vm5 = vcmask 1046534   ;;  %vm1410_vm6 = vcmask 1047559   ;;  %s1567_s23 = sshll.u32 (%p854_p2), %s3204_s13, 4  ;;  %s2442_s24 = smov (%p854_p2), [#allocation18]   ;;  %s1568_s23 = int_to_ptr.hbm [resolvable:$true] %s1567_s23 }
 0x5fc   : > { %903 = vmatpush.bf16.msra.mxu0 %v1762_v30  ;;  %s1565_s4 = sshll.u32 (%p854_p2), %s2442_s24, 4  ;;  %s1566_s4 = int_to_ptr.vmem [resolvable:$true] %s1565_s4 }
 0x600   : > { %904 = vmatpush.bf16.msra.mxu0 %v1758_v21  ;;  %1017 = vmatpush.bf16.xpose.msrb.mxu1 %v1008_v54 }
 0x601   : > { %1059 = vmatpush.bf16.xpose.msrb.mxu3 %v1050_v57 }
 0x604   : > { %905 = vmatpush.bf16.msra.mxu0 %v1754_v37 }
 0x608   : > { %975 = vmatpush.bf16.xpose.msrb.mxu0 %v966_v11 }
 0x669   : > { %v862_v0 = vpop.permute.xlu0 %861 }
 0x66a   : > { %v865_v1 = vsel %vm214_vm1, %v862_v0, %v2408_v38  ;;  %v1092_v0 = vsel %vm257_vm2, %v3012_v56, 0 }
 0x66b   : > { %v866_v7 = vpack.c.bf16 %v865_v1, %v865_v1 }
 0x66d   : > { %1767 = vmatmul.msk.bf16.vlgmr.msra.gmra.mxu0 %vm257_vm2, %v866_v7 }
 0x66e   : > { %1080 = vmatpush.bf16.xpose.msra.mxu0 %v1071_v58 }
 0x6ea   : > { %v907_v62 = vpop.f32.mrf.mxu0 }
 0x6eb   : > { %v908_v22 = vadd.f32 %v907_v62, %v868_v61 }
 0x6ed   : > { %v911_v23 = vpack.c.bf16 %v908_v22, %v908_v22 }
 0x6ef   : > { %v913_v55 = vrot.slane %v911_v23, 3 }
 0x6f1   : > { %v917_v24 = vsel %vm914_vm9, %v911_v23, %v913_v55  ;;  %v920_v27 = vsel %vm919_vm10, %v911_v23, %v913_v55  ;;  %v924_v28 = vsel %vm923_vm11, %v911_v23, %v913_v55  ;;  %v928_v57 = vsel %vm927_vm13, %v911_v23, %v913_v55 }
 0x6f2   : > { %v909_v63 = vpop.f32.mrf.mxu0  ;;  %v932_v29 = vunpack.i.h.s16 %v917_v24  ;;  %v1768_v30 = vpack.i.b16 %v917_v24, %v917_v24  ;;  %v922_v21 = vrot.slane %v920_v27, 1  ;;  %v926_v37 = vrot.slane %v924_v28, 2 }
 0x6f3   : > { %v930_v62 = vrot.slane %v928_v57, 3 }
 0x6f4   : > { %v940_v1 = vperm.slane %v1768_v30, 0  ;;  %v960_v7 = vpack.i.b16 %v932_v29, %v932_v29  ;;  %v1771_v11 = vpack.i.b16 %v922_v21, %v922_v21  ;;  %v1774_v12 = vpack.i.b16 %v926_v37, %v926_v37 }
 0x6f5   : > { %v934_v58 = vunpack.i.h.s16 %v922_v21  ;;  %v936_v61 = vunpack.i.h.s16 %v926_v37  ;;  %v1777_v27 = vpack.i.b16 %v930_v62, %v930_v62  ;;  %v938_v30 = vunpack.i.h.s16 %v930_v62 }
 0x6f6   : > { %1769 = vmatmul.msk.bf16.vlgmr.msra.gmra.mxu1 %vm257_vm2, %v940_v1  ;;  %v961_v13 = vperm.slane %v960_v7, 0  ;;  %v982_v48 = vperm.slane %v1771_v11, 0  ;;  %v1024_v54 = vperm.slane %v1774_v12, 0 }
 0x6f7   : > { %1101 = vmatpush.bf16.xpose.msra.mxu1 %v1092_v0  ;;  %v1002_v22 = vpack.i.b16 %v934_v58, %v934_v58  ;;  %v1044_v24 = vpack.i.b16 %v936_v61, %v936_v61  ;;  %v1066_v29 = vperm.slane %v1777_v27, 0  ;;  %v1086_v0 = vpack.i.b16 %v938_v30, %v938_v30 }
 0x6f8   : > { %1770 = vmatmul.msk.bf16.vlgmr.msrb.gmra.mxu0 %vm257_vm2, %v961_v13  ;;  %1772 = vmatmul.msk.bf16.vlgmr.msra.gmra.mxu3 %vm257_vm2, %v982_v48 }
 0x6f9   : > { %1775 = vmatmul.msk.bf16.vlgmr.msra.gmra.mxu2 %vm257_vm2, %v1024_v54  ;;  %v1003_v28 = vperm.slane %v1002_v22, 0  ;;  %v1045_v63 = vperm.slane %v1044_v24, 0  ;;  %v1087_v1 = vperm.slane %v1086_v0, 0 }
 0x706   : > { %1773 = vmatmul.msk.bf16.vlgmr.msrb.gmra.mxu1 %vm257_vm2, %v1003_v28 }
 0x708   : > { %1776 = vmatmul.msk.bf16.vlgmr.msrb.gmra.mxu3 %vm257_vm2, %v1045_v63  ;;  %1778 = vmatmul.msk.bf16.vlgmr.msra.gmra.mxu0 %vm257_vm2, %v1066_v29 }
 0x716   : > { %1779 = vmatmul.msk.bf16.vlgmr.msra.gmra.mxu1 %vm257_vm2, %v1087_v1 }
 0x773   : > { %v956_v23 = vpop.f32.mrf.mxu1 }
 0x774   : > { %v1108_v55 = vsel %vm1107_vm14, %v956_v23, -inf }
 0x775   : > { %1109 = vmax.xlane.f32.xlu0 %v1108_v55  ;;  %v977_v21 = vpop.f32.mrf.mxu0 }
 0x776   : > { %v1111_v37 = vsel %vm1107_vm14, %v977_v21, -inf }
 0x777   : > { %1112 = vmax.xlane.f32.xlu1 %v1111_v37 }
 0x77b   : > { %v958_v7 = vpop.f32.mrf.mxu1  ;;  %v998_v11 = vpop.f32.mrf.mxu3 }
 0x77c   : > { %v1040_v12 = vpop.f32.mrf.mxu2  ;;  %v1114_v48 = vsel %vm1107_vm14, %v998_v11, -inf }
 0x77d   : > { %v979_v13 = vpop.f32.mrf.mxu0  ;;  %v1120_v27 = vsel %vm1107_vm14, %v1040_v12, -inf }
 0x77f   : > { %1115 = vmax.xlane.f32.xlu1 %v1114_v48 }
 0x783   : > { %v1000_v54 = vpop.f32.mrf.mxu3  ;;  %v1019_v57 = vpop.f32.mrf.mxu1 }
 0x784   : > { %v1042_v58 = vpop.f32.mrf.mxu2  ;;  %v1117_v61 = vsel %vm1107_vm14, %v1019_v57, -inf }
 0x785   : > { %1118 = vmax.xlane.f32.xlu2 %v1117_v61  ;;  %v1082_v62 = vpop.f32.mrf.mxu0 }
 0x786   : > { %v1126_v1 = vsel %vm1107_vm14, %v1082_v62, -inf }
 0x78b   : > { %v1021_v22 = vpop.f32.mrf.mxu1  ;;  %v1061_v24 = vpop.f32.mrf.mxu3 }
 0x78c   : > { %v1123_v28 = vsel %vm1107_vm14, %v1061_v24, -inf }
 0x78d   : > { %1121 = vmax.xlane.f32.xlu2 %v1120_v27  ;;  %1124 = vmax.xlane.f32.xlu1 %v1123_v28  ;;  %v1084_v63 = vpop.f32.mrf.mxu0 }
 0x793   : > { %v1063_v29 = vpop.f32.mrf.mxu3  ;;  %v1103_v30 = vpop.f32.mrf.mxu1 }
 0x794   : > { %v1129_v0 = vsel %vm1107_vm14, %v1103_v30, -inf }
 0x795   : > { %1130 = vmax.xlane.f32.xlu1 %v1129_v0  ;;  %1127 = vmax.xlane.f32.xlu2 %v1126_v1 }
 0x79b   : > { %v1105_v55 = vpop.f32.mrf.mxu1 }
 0x7e8   : > { %v1110_v37 = vpop.xlane.xlu0 %1109 }
 0x7e9   : > { %v1132_v7 = vsub.f32 %v956_v23, %v1110_v37 }
 0x7ea   : > { %v1113_v13 = vpop.xlane.xlu1 %1112 }
 0x7eb   : > { %v1140_v48 = vmul.f32 1.442695, %v1132_v7  ;;  %v1133_v54 = vsub.f32 %v977_v21, %v1113_v13 }
 0x7ed   : > { %2046 = vpow2.f32 %v1140_v48  ;;  %v1142_v58 = vmul.f32 1.442695, %v1133_v54 }
 0x7ef   : > { %2048 = vpow2.f32 %v1142_v58 }
 0x7f2   : > { %v1116_v61 = vpop.xlane.xlu1 %1115 }
 0x7f3   : > { %v3080_v22 = vpop.eup %2046  ;;  %v1134_v27 = vsub.f32 %v998_v11, %v1116_v61 }
 0x7f4   : > { %v1156_v28 = vsel %vm1107_vm14, %v3080_v22, 0.0 }
 0x7f5   : > { %v3084_v63 = vpop.eup %2048  ;;  %v1144_v29 = vmul.f32 1.442695, %v1134_v27  ;;  %1157 = vadd.xlane.f32.xlu2 %v1156_v28 }
 0x7f6   : > { %v1159_v23 = vsel %vm1107_vm14, %v3084_v63, 0.0 }
 0x7f7   : > { %2050 = vpow2.f32 %v1144_v29  ;;  %1160 = vadd.xlane.f32.xlu1 %v1159_v23 }
 0x7f8   : > { %v1119_v21 = vpop.xlane.xlu2 %1118 }
 0x7f9   : > { %v1135_v0 = vsub.f32 %v1019_v57, %v1119_v21 }
 0x7fb   : > { %v1146_v1 = vmul.f32 1.442695, %v1135_v0 }
 0x7fd   : > { %v3088_v55 = vpop.eup %2050  ;;  %2052 = vpow2.f32 %v1146_v1 }
 0x7fe   : > { %v1162_v11 = vsel %vm1107_vm14, %v3088_v55, 0.0 }
 0x7ff   : > { %1163 = vadd.xlane.f32.xlu2 %v1162_v11 }
 0x800   : > { %v1122_v37 = vpop.xlane.xlu2 %1121  ;;  %v1125_v7 = vpop.xlane.xlu1 %1124 }
 0x801   : > { %v1136_v13 = vsub.f32 %v1040_v12, %v1122_v37  ;;  %v1137_v48 = vsub.f32 %v1061_v24, %v1125_v7 }
 0x803   : > { %v3092_v54 = vpop.eup %2052  ;;  %v1148_v58 = vmul.f32 1.442695, %v1136_v13  ;;  %v1150_v61 = vmul.f32 1.442695, %v1137_v48  ;;  %v1209_v13 = vsel %vm201_vm0, %v2998_v39, 0  ;;  %v1227_v48 = vsel %vm201_vm0, %v3000_v42, 0 }
 0x804   : > { %v1165_v27 = vsel %vm1107_vm14, %v3092_v54, 0.0  ;;  %1218 = vmatpush.bf16.msrb.mxu2 %v1209_v13  ;;  %1236 = vmatpush.bf16.msra.mxu3 %v1227_v48 }
 0x805   : > { %2054 = vpow2.f32 %v1148_v58  ;;  %1166 = vadd.xlane.f32.xlu1 %v1165_v27  ;;  %v1245_v58 = vsel %vm201_vm0, %v3002_v43, 0  ;;  %v1281_v27 = vsel %vm201_vm0, %v3006_v45, 0 }
 0x806   : > { %2056 = vpow2.f32 %v1150_v61  ;;  %1254 = vmatpush.bf16.msrb.mxu0 %v1245_v58  ;;  %v1263_v61 = vsel %vm201_vm0, %v3004_v44, 0 }
 0x807   : > { %1272 = vmatpush.bf16.msrb.mxu1 %v1263_v61 }
 0x808   : > { %v1131_v57 = vpop.xlane.xlu1 %1130  ;;  %v1128_v28 = vpop.xlane.xlu2 %1127  ;;  %1290 = vmatpush.bf16.msra.mxu2 %v1281_v27 }
 0x809   : > { %v1139_v29 = vsub.f32 %v1103_v30, %v1131_v57  ;;  %v1138_v23 = vsub.f32 %v1082_v62, %v1128_v28  ;;  %v1299_v57 = vsel %vm201_vm0, %v3008_v49, 0 }
 0x80a   : > { %1308 = vmatpush.bf16.msrb.mxu3 %v1299_v57 }
 0x80b   : > { %v3096_v21 = vpop.eup %2054  ;;  %v1154_v0 = vmul.f32 1.442695, %v1139_v29  ;;  %v1152_v1 = vmul.f32 1.442695, %v1138_v23  ;;  %v1317_v23 = vsel %vm201_vm0, %v3010_v53, 0 }
 0x80c   : > { %v2057_v12 = vpop.eup %2056  ;;  %v1168_v24 = vsel %vm1107_vm14, %v3096_v21, 0.0  ;;  %1326 = vmatpush.bf16.msra.mxu0 %v1317_v23 }
 0x80d   : > { %2058 = vpow2.f32 %v1154_v0  ;;  %v1171_v11 = vsel %vm1107_vm14, %v2057_v12, 0.0  ;;  %1169 = vadd.xlane.f32.xlu2 %v1168_v24  ;;  %v1335_v0 = vsel %vm201_vm0, %v3012_v56, 0 }
 0x80e   : > { %2060 = vpow2.f32 %v1152_v1  ;;  %1172 = vadd.xlane.f32.xlu1 %v1171_v11  ;;  %1344 = vmatpush.bf16.msra.mxu1 %v1335_v0 }
 0x813   : > { %v3101_v37 = vpop.eup %2058 }
 0x814   : > { %v3103_v7 = vpop.eup %2060  ;;  %v1177_v62 = vsel %vm1107_vm14, %v3101_v37, 0.0 }
 0x815   : > { %1178 = vadd.xlane.f32.xlu0 %v1177_v62  ;;  %v1174_v30 = vsel %vm1107_vm14, %v3103_v7, 0.0 }
 0x816   : > { %1175 = vadd.xlane.f32.xlu2 %v1174_v30 }
 0x868   : > { %v1158_v28 = vpop.xlane.xlu2 %1157 }
 0x869   : > { %2062 = vrcp.f32 %v1158_v28 }
 0x86a   : > { %v1161_v29 = vpop.xlane.xlu1 %1160 }
 0x86b   : > { %2064 = vrcp.f32 %v1161_v29 }
 0x86f   : > { %v2063_v1 = vpop.eup %2062 }
 0x870   : > { %v1188_v24 = vmul.f32 %v2063_v1, %v3080_v22 }
 0x871   : > { %v2065_v11 = vpop.eup %2064 }
 0x872   : > { %v1189_v62 = vmul.f32 %v2065_v11, %v3084_v63  ;;  %v1164_v30 = vpop.xlane.xlu2 %1163  ;;  %v1196_v13 = vpack.c.bf16 %v1188_v24, %v1188_v24 }
 0x873   : > { %2066 = vrcp.f32 %v1164_v30 }
 0x874   : > { %v1197_v48 = vpack.c.bf16 %v1189_v62, %v1189_v62  ;;  %1780 = vmatmul.msk.bf16.vlgmr.msrb.gmra.mxu2 %vm1204_vm15, %v1196_v13 }
 0x876   : > { %1781 = vmatmul.msk.bf16.vlgmr.msra.gmra.mxu3 %vm1204_vm15, %v1197_v48 }
 0x878   : > { %v1167_v58 = vpop.xlane.xlu1 %1166 }
 0x879   : > { %v2067_v61 = vpop.eup %2066  ;;  %2068 = vrcp.f32 %v1167_v58 }
 0x87a   : > { %v1190_v27 = vmul.f32 %v2067_v61, %v3088_v55 }
 0x87c   : > { %v1198_v57 = vpack.c.bf16 %v1190_v27, %v1190_v27 }
 0x87e   : > { %1782 = vmatmul.msk.bf16.vlgmr.msrb.gmra.mxu0 %vm1204_vm15, %v1198_v57 }
 0x87f   : > { %v2069_v22 = vpop.eup %2068 }
 0x880   : > { %v1191_v28 = vmul.f32 %v2069_v22, %v3092_v54  ;;  %v1170_v63 = vpop.xlane.xlu2 %1169 }
 0x881   : > { %v1173_v29 = vpop.xlane.xlu1 %1172  ;;  %2070 = vrcp.f32 %v1170_v63  ;;  %v1828_v63 = vor.u32 %v2957_v33, %v2955_v32 }
 0x882   : > { %v1199_v23 = vpack.c.bf16 %v1191_v28, %v1191_v28  ;;  %2072 = vrcp.f32 %v1173_v29 }
 0x883   : > { %1473 = vmatpush.bf16.msrb.mxu2 %v1828_v63 }
 0x884   : > { %1783 = vmatmul.msk.bf16.vlgmr.msrb.gmra.mxu1 %vm1204_vm15, %v1199_v23 }
 0x887   : > { %v2071_v0 = vpop.eup %2070 }
 0x888   : > { %v2073_v1 = vpop.eup %2072  ;;  %v1192_v24 = vmul.f32 %v2071_v0, %v3096_v21  ;;  %v1179_v11 = vpop.xlane.xlu0 %1178 }
 0x889   : > { %v1193_v62 = vmul.f32 %v2073_v1, %v2057_v12  ;;  %2074 = vrcp.f32 %v1179_v11  ;;  %v1176_v55 = vpop.xlane.xlu2 %1175  ;;  %v1820_v1 = vor.u32 %v2949_v51, %v2947_v50 }
 0x88a   : > { %v1200_v30 = vpack.c.bf16 %v1192_v24, %v1192_v24  ;;  %2076 = vrcp.f32 %v1176_v55 }
 0x88b   : > { %v1201_v13 = vpack.c.bf16 %v1193_v62, %v1193_v62 }
 0x88c   : > { %1784 = vmatmul.msk.bf16.vlgmr.msra.gmra.mxu2 %vm1204_vm15, %v1200_v30 }
 0x88d   : > { %1785 = vmatmul.msk.bf16.vlgmr.msrb.gmra.mxu3 %vm1204_vm15, %v1201_v13  ;;  %v1816_v13 = vor.u32 %v2944_v47, %v2942_v46 }
 0x88f   : > { %v2075_v54 = vpop.eup %2074 }
 0x890   : > { %v2077_v48 = vpop.eup %2076  ;;  %v1195_v58 = vmul.f32 %v2075_v54, %v3101_v37  ;;  %v1824_v37 = vor.u32 %v2953_v31, %v2951_v52 }
 0x891   : > { %v1194_v61 = vmul.f32 %v2077_v48, %v3103_v7 }
 0x892   : > { %v1203_v27 = vpack.c.bf16 %v1195_v58, %v1195_v58  ;;  %1474 = vmatpush.bf16.msrb.mxu2 %v1824_v37 }
 0x893   : > { %v1202_v57 = vpack.c.bf16 %v1194_v61, %v1194_v61 }
 0x894   : > { %1787 = vmatmul.msk.bf16.vlgmr.msra.gmra.mxu1 %vm1204_vm15, %v1203_v27  ;;  %v1812_v27 = vor.u32 %v2938_v41, %v2936_v40 }
 0x895   : > { %1786 = vmatmul.msk.bf16.vlgmr.msra.gmra.mxu0 %vm1204_vm15, %v1202_v57 }
 0x896   : > { %1475 = vmatpush.bf16.msrb.mxu2 %v1820_v1 }
 0x89a   : > { %1476 = vmatpush.bf16.msrb.mxu2 %v1816_v13 }
 0x89e   : > { %1477 = vmatpush.bf16.msrb.mxu2 %v1812_v27  ;;  %v1804_v27 = vor.u32 %v2926_v17, %v2924_v59 }
 0x8f7   : > { %v1220_v21 = vpop.f32.mrf.mxu2 }
 0x8f8   : > { %v1353_v55 = vpack.c.bf16 %v1220_v21, %v1220_v21 }
 0x8f9   : > { %v1238_v12 = vpop.f32.mrf.mxu3 }
 0x8fa   : > { %v1354_v7 = vpack.c.bf16 %v1238_v12, %v1238_v12  ;;  %v1370_v61 = vunpack.c.l.b16 %v1353_v55 }
 0x8fb   : > { %v1256_v22 = vpop.f32.mrf.mxu0 }
 0x8fc   : > { %v1355_v24 = vpack.c.bf16 %v1256_v22, %v1256_v22  ;;  %v1371_v11 = vunpack.c.l.b16 %v1354_v7  ;;  %v1789_v21 = vunpack.i.l.s16 %v1370_v61  ;;  %v1808_v7 = vor.u32 %v2931_v26, %v2929_v25 }
 0x8fe   : > { %v1372_v54 = vunpack.c.l.b16 %v1355_v24  ;;  %v1790_v48 = vunpack.i.l.s16 %v1371_v11  ;;  %1478 = vmatpush.bf16.msrb.mxu2 %v1808_v7 }
 0x8ff   : > { %v1222_v28 = vpop.f32.mrf.mxu2 }
 0x900   : > { %v1791_v57 = vunpack.i.l.s16 %v1372_v54  ;;  %v1394_v12 = vrot.slane %v1790_v48, 7 }
 0x901   : > { %v1240_v29 = vpop.f32.mrf.mxu3  ;;  %v1274_v23 = vpop.f32.mrf.mxu1 }
 0x902   : > { %v1356_v62 = vpack.c.bf16 %v1274_v23, %v1274_v23  ;;  %1479 = vmatpush.bf16.msrb.mxu2 %v1804_v27 }
 0x903   : > { %v1258_v0 = vpop.f32.mrf.mxu0 }
 0x904   : > { %v1373_v58 = vunpack.c.l.b16 %v1356_v62  ;;  %v1396_v0 = vrot.slane %v1791_v57, 6  ;;  %v1395_v62 = vsel %vm919_vm10, %v1394_v12, %v1789_v21 }
 0x906   : > { %v1792_v28 = vunpack.i.l.s16 %v1373_v58 }
 0x908   : > { %v1398_v55 = vrot.slane %v1792_v28, 5 }
 0x909   : > { %v1276_v30 = vpop.f32.mrf.mxu1 }
 0x90f   : > { %v1292_v22 = vpop.f32.mrf.mxu2 }
 0x910   : > { %v1357_v63 = vpack.c.bf16 %v1292_v22, %v1292_v22  ;;  %v1310_v29 = vpop.f32.mrf.mxu3  ;;  %v1397_v22 = vsel %vm923_vm11, %v1396_v0, %v1395_v62  ;;  %v1800_v0 = vor.u32 %v2922_v18, %v2920_v16 }
 0x911   : > { %v1358_v23 = vpack.c.bf16 %v1310_v29, %v1310_v29  ;;  %v1346_v37 = vpop.f32.mrf.mxu1  ;;  %v1399_v29 = vsel %vm927_vm13, %v1398_v55, %v1397_v22  ;;  %v1423_v22 = vperm.slane %v2963_v4, 0 }
 0x912   : > { %v1374_v1 = vunpack.c.l.b16 %v1357_v63  ;;  %v1328_v24 = vpop.f32.mrf.mxu0  ;;  %v1360_v11 = vpack.c.bf16 %v1346_v37, %v1346_v37  ;;  %1480 = vmatpush.bf16.msrb.mxu2 %v1800_v0 }
 0x913   : > { %v1375_v30 = vunpack.c.l.b16 %v1358_v23  ;;  %v1359_v13 = vpack.c.bf16 %v1328_v24, %v1328_v24 }
 0x914   : > { %v1793_v54 = vunpack.i.l.s16 %v1374_v1  ;;  %v1377_v48 = vunpack.c.l.b16 %v1360_v11 }
 0x915   : > { %v1794_v58 = vunpack.i.l.s16 %v1375_v30  ;;  %v1376_v61 = vunpack.c.l.b16 %v1359_v13 }
 0x916   : > { %v1400_v57 = vrot.slane %v1793_v54, 4  ;;  %v1796_v63 = vunpack.i.l.s16 %v1377_v48  ;;  %v1361_v54 = vpack.c.bf16 %v2412_v20, %v2412_v20  ;;  %v1352_v48 = vld [vmem:[%s1351_s18] sm:$0xf] }
 0x917   : > { %v1403_v12 = vrot.slane %v1794_v58, 3  ;;  %v1795_v28 = vunpack.i.l.s16 %v1376_v61  ;;  %v1294_v21 = vpop.f32.mrf.mxu2 }
 0x918   : > { %v1402_v23 = vsel %vm1401_vm3, %v1400_v57, %v1399_v29  ;;  %v1409_v37 = vrot.slane %v1796_v63, 1  ;;  %v1312_v1 = vpop.f32.mrf.mxu3 }
 0x919   : > { %v1405_v24 = vsel %vm1404_vm4, %v1403_v12, %v1402_v23  ;;  %v1406_v7 = vrot.slane %v1795_v28, 2  ;;  %v1348_v11 = vpop.f32.mrf.mxu1 }
 0x91a   : > { %v1330_v62 = vpop.f32.mrf.mxu0 }
 0x91b   : > { %v1408_v30 = vsel %vm1407_vm5, %v1406_v7, %v1405_v24 }
 0x91c   : > { %v1411_v13 = vsel %vm1410_vm6, %v1409_v37, %v1408_v30 }
 0x91d   : > { %v1412_v55 = vpack.c.b16 %v1411_v13, %v1411_v13 }
 0x91f   : > { %1413 = vrot.lane.b32.xlu1 %v1412_v55, %s2439_s12 }
 0x991   : > { %v1414_v58 = vpop.permute.xlu1 %1413 }
 0x992   : > { %v1417_v61 = vsel %vm214_vm1, %v1352_v48, %v1414_v58 }
 0x993   : > { %v1420_v27 = vsel %vm518_vm12, %v1417_v61, %v1361_v54 }
 0x994   : > { %1481 = vmatmul.bf16.vlgmr.msrb.gmra.mxu2 %v1420_v27 }
 0xa17   : > { %v1482_v57 = vpop.f32.mrf.mxu2 }
 0xa18   : > { %v1483_v63 = vadd.f32 %v1482_v57, %v1423_v22  ;;  %v1837_v22 = vor.u32 %v2983_v60, %v2978_v14  ;;  %v1833_v57 = vor.u32 %v2973_v6, %v2968_v5 }
 0xa1a   : > { %2078 = vtanh.f32 %v1483_v63  ;;  %v1829_v28 = vmul.f32 -1.442695, %v1483_v63  ;;  %1551 = vmatpush.bf16.msra.mxu3 %v1837_v22 }
 0xa1c   : > { %2080 = vpow2.f32 %v1829_v28 }
 0xa1e   : > { %1552 = vmatpush.bf16.msra.mxu3 %v1833_v57 }
 0xa1f   : > { %v1484_v29 = vpop.f32.mrf.mxu2 }
 0xa20   : > { %v2079_v12 = vpop.eup %2078 }
 0xa21   : > { %1508 = vrot.lane.b32.xlu2 %v2079_v12, %s2440_s0  ;;  %v1525_v12 = vperm.slane %v2991_v19, 0 }
 0xa22   : > { %v2081_v20 = vpop.eup %2080 }
 0xa23   : > { %v1489_v21 = vadd.f32 1.0, %v2081_v20 }
 0xa25   : > { %2082 = vrcp.f32 %v1489_v21  ;;  %v1501_v11 = vand.u32 2147483648, %v1489_v21  ;;  %vm1495_vm8 = vweird.f32 %v1489_v21  ;;  %v1499_v0 = vand.u32 2147483647, %v1489_v21 }
 0xa27   : > { %v1502_v30 = vor.u32 1.1754944e-38, %v1501_v11  ;;  %vm1500_vm10 = vcmp.eq.f32.partialorder %v1499_v0, 8.507059e+37 }
 0xa2b   : > { %v2083_v23 = vpop.eup %2082 }
 0xa2c   : > { %v1491_v37 = vmul.f32 %v2083_v23, %v1489_v21  ;;  %vm1496_vm7 = vweird.f32 %v2083_v23 }
 0xa2d   : > { %vm1497_vm9 = vmor %vm1495_vm8, %vm1496_vm7 }
 0xa2e   : > { %v1492_v1 = vsub.f32 1.0, %v1491_v37 }
 0xa30   : > { %v1493_v24 = vmul.f32 %v2083_v23, %v1492_v1 }
 0xa32   : > { %v1494_v7 = vadd.f32 %v2083_v23, %v1493_v24 }
 0xa34   : > { %v1498_v62 = vsel %vm1497_vm9, %v2083_v23, %v1494_v7 }
 0xa35   : > { %v1503_v55 = vsel %vm1500_vm10, %v1502_v30, %v1498_v62 }
 0xa36   : > { %v1506_v48 = vmul.f32 %v2408_v38, %v1503_v55 }
 0xa7b   : > { %v1509_v13 = vpop.permute.xlu2 %1508 }
 0xa7c   : > { %v1511_v54 = vmul.f32 %v1509_v13, %v1503_v55 }
 0xa7e   : > { %1513 = vrot.lane.b32.xlu0 %v1511_v54, %s2439_s12 }
 0xaf0   : > { %v1514_v58 = vpop.permute.xlu0 %1513 }
 0xaf1   : > { %v1516_v38 = vadd.f32 %v1514_v58, %v1506_v48  }
 0xaf3   : > { %2084 = vtanh.f32 %v1516_v38  ;;  %v1523_v61 = vpack.c.bf16 %v1516_v38, %v1516_v38 }
 0xaf5   : > { %1528 = vrot.lane.b32.xlu0 %v1523_v61, %s2441_s19 }
 0xaf9   : > { %v2085_v27 = vpop.eup %2084 }
 0xafa   : > { %1519 = vrot.lane.b32.xlu2 %v2085_v27, %s2440_s0 }
 0xb54   : > { %v1520_v63 = vpop.permute.xlu2 %1519 }
 0xb55   : > { %v1522_v20 = vmul.f32 %v1520_v63, %v1503_v55  }
 0xb67   : > { %v1529_v29 = vpop.permute.xlu0 %1528 }
 0xb68   : > { %1838 = vmatmul.msk.bf16.vlgmr.msra.gmra.mxu3 %vm214_vm1, %v1529_v29 }
 0xbeb   : > { %v1554_v28 = vpop.f32.mrf.mxu3 }
 0xbec   : > { %v1555_v21 = vadd.f32 %v1554_v28, %v1525_v12 }
 0xbee   : > { %1560 = vst.msk [vmem:[%s1559_s21] sm:$0xff] %vm257_vm2, %v1555_v21 }
 0xbef   :  { %856 = sbr.rel (!%p854_p2) target bundleno = 1526 (0x5f6), region = 161 }
 0xbf0   :  { %1573 = dma.vmem_to_hbm [thread:$0]  (%p854_p2), %s1566_s4, 512, %s1568_s23, [#allocation6], %s2422_s20, %s2422_s20, %s2423_s2  }
 0xbf3   : > { %v1556_v23 = vpop.f32.mrf.mxu3 }
 0xbf4   :  { %2364 = dma.done.wait [#allocation6], 512  }
 0xbf5   :  { %2365 = vsyncadd [#allocation6], 4294966784 }
 0xbf6   :  { %1578 = vsyncpa [#allocation5], 1 }
 0xbf7   :  { %1579 = vsyncpa [#allocation8], 1 }
 0xbf8   :  { %1580 = vsyncpa [#allocation11], 1 }
 0xbf9   :  { %1581 = vsyncpa [#allocation14], 1 }
 0xbfa   :  { %1582 = vsyncpa [#allocation17], 1 }
 0xbfb   :  { %1583 = vsyncpa [#allocation6], 1 }

</bundles_post_ra>
